<compile_context>
chip_gen: v7x
topology: tpu7x:2x2x1
jax: 0.10.0
libtpu: 0.0.40
codegen_flags: <defaults>
</compile_context>

<pallas_src>
import math

import jax
import jax.numpy as jnp
from jax.experimental import pallas as pl
from jax.experimental.pallas import tpu as pltpu

# --- synthetic config (cfg.*) -------------------------------------------------
B = 2           # graphs per call (grid axis)
N = 16          # nodes per graph
F_IN = 8        # raw node feature dim (dim_in)
F_PAD = 16      # feature dim zero-padded to a bf16 packed-tile row count
D = 32          # cfg.gnn.dim_inner == cfg.gt.dim_hidden
H = 4           # cfg.gt.n_heads
DH = D // H     # per-head channels (concat=True -> H * DH == D)
L = 2           # cfg.gt.layers
D_OUT = 4       # dim_out
BN_EPS = 1e-5
LANES = 4 * D   # 128: lane width of parameter slabs / fused QKVR projection

# weight-slab row offsets — all multiples of 16 (bf16 (16,128) packed tiles)
R_ENC = 0
R_PRE = R_ENC + F_PAD                   # 16
R_QKVR = R_PRE + D                      # 48
R_HEAD = R_QKVR + L * D                 # 112
W_ROWS = R_HEAD + D                     # 144

# vector-slab (bias / BN / folded-beta) row offsets (f32)
V_BENC, V_BNG, V_BNB, V_BPRE = 0, 1, 2, 3
V_BQKVR = 4                             # rows V_BQKVR + l
V_WB = V_BQKVR + L                      # wb_o(l) at V_WB+2l, wb_r(l) at V_WB+2l+1
V_BHEAD = V_WB + 2 * L
V_ROWS = ((V_BHEAD + 1 + 7) // 8) * 8   # pad to a sublane-tile multiple (16)


def unimp_kernel(x_ref, bias_ref, hsel_ref, wslab_ref, vslab_ref, out_ref):
    f32, bf16 = jnp.float32, jnp.bfloat16

    def mm(a, b):                         # bf16 MXU operands, f32 accumulate
        return jnp.dot(a.astype(bf16), b.astype(bf16), preferred_element_type=f32)

    def mm_t(a, b):                       # a @ b.T without materializing b.T
        return jax.lax.dot_general(
            a.astype(bf16), b.astype(bf16),
            dimension_numbers=(((1,), (1,)), ((), ())),
            preferred_element_type=f32)

    vs = vslab_ref[...]                   # [V_ROWS, 128] f32 (tiny)
    x = x_ref[0]                          # [N, F_PAD]
    bias_stack = bias_ref[0]              # [H*N, N] additive mask (0 / -1e30)
    head_sel = hsel_ref[...]              # [H*N, D] static head selector (0/1)

    # ---- FeatureEncoder: node Linear + BatchNorm1dNode (batch statistics) ----
    h = (mm(x, wslab_ref[R_ENC:R_ENC + F_PAD, 0:D])
         + vs[V_BENC:V_BENC + 1, 0:D])
    mu = jnp.mean(h, axis=0, keepdims=True)
    var = jnp.mean((h - mu) ** 2, axis=0, keepdims=True)
    h = ((h - mu) * jax.lax.rsqrt(var + BN_EPS) * vs[V_BNG:V_BNG + 1, 0:D]
         + vs[V_BNB:V_BNB + 1, 0:D])

    # ---- pre_mp: Linear + ReLU ------------------------------------------------
    h = jnp.maximum(
        mm(h, wslab_ref[R_PRE:R_PRE + D, 0:D]) + vs[V_BPRE:V_BPRE + 1, 0:D], 0.0)

    # ---- L x TransformerConv (UniMP) with beta gating --------------------------
    for l in range(L):
        # Fused q|k|v|r projection: one [N, D] x [D, 4D] matmul (lane-dense out).
        # The 1/sqrt(DH) softmax scale is pre-folded into the q weight/bias block.
        qkvr = (mm(h, wslab_ref[R_QKVR + D * l:R_QKVR + D * (l + 1), :])
                + vs[V_BQKVR + l:V_BQKVR + l + 1, :])            # [N, 4D]
        q = qkvr[:, 0:D]
        k = qkvr[:, D:2 * D]
        v = qkvr[:, 2 * D:3 * D]
        r = qkvr[:, 3 * D:4 * D]

        # All H heads at once, stacked along sublanes via the head-selector mask:
        # s[hh*N+i, j] = q_hh[i] . k_hh[j]  (zeros in q_stack kill other heads).
        q_stack = jnp.concatenate([q] * H, axis=0) * head_sel    # [H*N, D]
        s = mm_t(q_stack, k) + bias_stack                         # [H*N, N]
        m = jnp.max(s, axis=-1, keepdims=True)
        p = jnp.exp(s - m)                                        # masked -> underflow to 0
        denom = jnp.maximum(jnp.sum(p, axis=-1, keepdims=True), 1e-20)
        a = p * pl.reciprocal(denom, approx=True)
        o_full = mm(a, v) * head_sel                              # [H*N, D]
        o = o_full[0:N]                                           # concat == masked sum
        for hh in range(1, H):
            o = o + o_full[hh * N:(hh + 1) * N]

        # beta gate (folded weights): g = sigmoid(sum(o*wb_o + r*wb_r, -1))
        wb_o = vs[V_WB + 2 * l:V_WB + 2 * l + 1, 0:D]
        wb_r = vs[V_WB + 2 * l + 1:V_WB + 2 * l + 2, 0:D]
        g = jax.nn.sigmoid(jnp.sum(o * wb_o + r * wb_r, axis=-1, keepdims=True))
        h = g * r + (1.0 - g) * o
        # TODO(synk): GRIT's registered 'UniMP' layer wrapper (norm/act/residual,
        # dropout) was not provided; only TransformerConv+beta semantics modeled.

    # ---- post_mp: node head Linear(D -> D_OUT), lane-dense padded to 128 ------
    out_ref[0] = (mm(h, wslab_ref[R_HEAD:R_HEAD + D, :])
                  + vs[V_BHEAD:V_BHEAD + 1, :])


# ---- parameter packing (2 slabs; all folds done wrapper-side in f32) -----------
def pack_params(params):
    (w_enc, b_enc, bn_g, bn_b, w_pre, b_pre,
     w_qkvr, b_qkvr, w_beta, w_head, b_head) = params

    def pad_lanes(a):
        return jnp.pad(a, ((0, 0), (0, LANES - a.shape[-1])))

    def pad_rows(a, rows):
        return jnp.pad(a, ((0, rows - a.shape[0]), (0, 0)))

    def row(a):
        a = a.reshape(1, -1)
        return jnp.pad(a, ((0, 0), (0, LANES - a.shape[-1])))

    scale = 1.0 / math.sqrt(DH)
    # fuse q|k|v|r weights: per input row d, concat [w_q[d]*s | w_k[d] | w_v[d] | w_r[d]]
    w_qkvr_f = jnp.concatenate(
        [w_qkvr[:, 0] * scale, w_qkvr[:, 1], w_qkvr[:, 2], w_qkvr[:, 3]],
        axis=-1)                                                  # [L, D, 4D]
    b_qkvr_f = jnp.concatenate(
        [b_qkvr[:, 0] * scale, b_qkvr[:, 1], b_qkvr[:, 2], b_qkvr[:, 3]],
        axis=-1)                                                  # [L, 4D]
    # fold the beta gate: sum(o*w0 + r*w1 + (o-r)*w2) == sum(o*(w0+w2) + r*(w1-w2))
    wb_o = w_beta[:, 0] + w_beta[:, 2]          # [L, D]
    wb_r = w_beta[:, 1] - w_beta[:, 2]          # [L, D]

    wslab = jnp.concatenate(
        [pad_lanes(pad_rows(w_enc, F_PAD)), pad_lanes(w_pre)]
        + [w_qkvr_f[l] for l in range(L)]
        + [pad_lanes(w_head)], axis=0).astype(jnp.bfloat16)      # [W_ROWS, 128]

    vrows = [row(b_enc), row(bn_g), row(bn_b), row(b_pre)]
    vrows += [b_qkvr_f[l:l + 1] for l in range(L)]
    for l in range(L):
        vrows += [row(wb_o[l]), row(wb_r[l])]
    vrows += [row(b_head)]
    vrows += [jnp.zeros((V_ROWS - (V_BHEAD + 1), LANES), jnp.float32)]
    vslab = jnp.concatenate(vrows, axis=0)                        # [V_ROWS, 128]

    assert wslab.shape == (W_ROWS, LANES)
    assert vslab.shape == (V_ROWS, LANES)
    return wslab, vslab


def unimp_forward(x, adj, params):
    """x: [B, N, F_IN] f32, adj: [B, N, N] f32 (adj must contain self-loops)."""
    wslab, vslab = pack_params(params)

    x_pad = jnp.pad(x, ((0, 0), (0, 0), (0, F_PAD - F_IN)))       # [B, N, F_PAD]
    # additive mask bias, pre-stacked over heads on the sublane axis
    bias = jnp.where(adj > 0.0, 0.0, -1e30).astype(jnp.float32)   # [B, N, N]
    bias_stack = jnp.tile(bias, (1, H, 1))                        # [B, H*N, N]
    # static head selector: head_sel[hh*N + i, d] == 1 iff column d belongs to head hh
    col = jnp.arange(D)[None, :]
    hh = jnp.arange(H * N)[:, None] // N
    head_sel = ((col // DH) == hh).astype(jnp.float32)            # [H*N, D]

    out = pl.pallas_call(
        unimp_kernel,
        out_shape=jax.ShapeDtypeStruct((B, N, LANES), jnp.float32),   # lane-dense slab
        grid=(B,),
        in_specs=[
            pl.BlockSpec((1, N, F_PAD), lambda b: (b, 0, 0)),
            pl.BlockSpec((1, H * N, N), lambda b: (b, 0, 0)),
            pl.BlockSpec((H * N, D), lambda b: (0, 0)),           # resident constants
            pl.BlockSpec((W_ROWS, LANES), lambda b: (0, 0)),
            pl.BlockSpec((V_ROWS, LANES), lambda b: (0, 0)),
        ],
        out_specs=pl.BlockSpec((1, N, LANES), lambda b: (b, 0, 0)),
        compiler_params=pltpu.CompilerParams(
            dimension_semantics=("parallel",)),
    )(x_pad, bias_stack, head_sel, wslab, vslab)
    return out[:, :, :D_OUT]


# ---- pure-JAX reference (module semantics; bf16 MXU operands like the kernel) --
def _unimp_reference_single(x, adj, params):
    (w_enc, b_enc, bn_g, bn_b, w_pre, b_pre,
     w_qkvr, b_qkvr, w_beta, w_head, b_head) = params
    bf16 = jnp.bfloat16

    def mm(a, b):
        return jnp.dot(a.astype(bf16), b.astype(bf16),
                       preferred_element_type=jnp.float32)

    mask = adj > 0.0
    h = mm(x, w_enc) + b_enc
    mu = h.mean(0, keepdims=True)
    var = ((h - mu) ** 2).mean(0, keepdims=True)
    h = (h - mu) / jnp.sqrt(var + BN_EPS) * bn_g + bn_b
    h = jnp.maximum(mm(h, w_pre) + b_pre, 0.0)
    scale = 1.0 / math.sqrt(DH)
    for l in range(L):
        q = mm(h, w_qkvr[l, 0]) + b_qkvr[l, 0][None, :]
        k = mm(h, w_qkvr[l, 1]) + b_qkvr[l, 1][None, :]
        v = mm(h, w_qkvr[l, 2]) + b_qkvr[l, 2][None, :]
        r = mm(h, w_qkvr[l, 3]) + b_qkvr[l, 3][None, :]
        outs = []
        for hh in range(H):
            sl = slice(hh * DH, (hh + 1) * DH)
            s = mm(q[:, sl], k[:, sl].T) * scale
            s = jnp.where(mask, s, -1e30)
            m = jnp.max(s, axis=-1, keepdims=True)
            p = jnp.where(mask, jnp.exp(s - m), 0.0)
            a = p / jnp.sum(p, axis=-1, keepdims=True)
            outs.append(mm(a, v[:, sl]))
        o = jnp.concatenate(outs, axis=-1)
        wb = w_beta[l]
        g = jax.nn.sigmoid(jnp.sum(o * wb[0] + r * wb[1] + (o - r) * wb[2],
                                   axis=-1, keepdims=True))
        h = g * r + (1.0 - g) * o
    return mm(h, w_head) + b_head


def unimp_reference(x, adj, params):
    return jnp.stack(
        [_unimp_reference_single(x[b], adj[b], params) for b in range(B)], axis=0)


def make_params(key):
    ks = jax.random.split(key, 10)

    def lin(k, shape, fan_in):
        return jax.random.normal(k, shape, jnp.float32) / jnp.sqrt(jnp.float32(fan_in))

    w_enc = lin(ks[0], (F_IN, D), F_IN)
    b_enc = 0.01 * jax.random.normal(ks[1], (1, D), jnp.float32)
    bn_g = jnp.ones((1, D), jnp.float32)
    bn_b = jnp.zeros((1, D), jnp.float32)
    w_pre = lin(ks[2], (D, D), D)
    b_pre = 0.01 * jax.random.normal(ks[3], (1, D), jnp.float32)
    w_qkvr = lin(ks[4], (L, 4, D, D), D)
    b_qkvr = 0.01 * jax.random.normal(ks[5], (L, 4, D), jnp.float32)
    w_beta = lin(ks[6], (L, 3, D), 3 * D)
    w_head = lin(ks[7], (D, D_OUT), D)
    b_head = 0.01 * jax.random.normal(ks[8], (1, D_OUT), jnp.float32)
    return (w_enc, b_enc, bn_g, bn_b, w_pre, b_pre,
            w_qkvr, b_qkvr, w_beta, w_head, b_head)


if __name__ == "__main__":
    key = jax.random.PRNGKey(0)
    k_x, k_adj, k_p = jax.random.split(key, 3)

    x = jax.random.normal(k_x, (B, N, F_IN), jnp.float32)
    adj = jax.random.bernoulli(k_adj, 0.3, (B, N, N)).astype(jnp.float32)
    adj = jnp.maximum(adj, jnp.eye(N, dtype=jnp.float32)[None])   # self-loops
    # precondition for the underflow-based masking: every row has >= 1 edge
    assert bool(jnp.all(jax.vmap(jnp.diagonal)(adj) > 0)), "adj must contain self-loops"
    params = make_params(k_p)

    out = jax.block_until_ready(unimp_forward(x, adj, params))
    ref = jax.block_until_ready(unimp_reference(x, adj, params))
    assert out.shape == (B, N, D_OUT)
    assert jnp.allclose(out, ref, atol=1e-2, rtol=1e-2), "mismatch vs reference"

    print("KERNEL_OK")
</pallas_src>

<mosaic_0001>
module attributes {stable_mosaic.version = 11 : i64} {
  func.func @unimp_kernel(%arg0: i32, %arg1: memref<1x16x16xf32, #tpu.memory_space<vmem>>, %arg2: memref<1x64x16xf32, #tpu.memory_space<vmem>>, %arg3: memref<64x32xf32, #tpu.memory_space<vmem>>, %arg4: memref<144x128xbf16, #tpu.memory_space<vmem>>, %arg5: memref<16x128xf32, #tpu.memory_space<vmem>>, %arg6: memref<1x16x128xf32, #tpu.memory_space<vmem>>) attributes {dimension_semantics = [#tpu.dimension_semantics<parallel>], iteration_bounds = array<i64: 2>, scalar_prefetch = 0 : i64, scratch_operands = 0 : i64, tpu.core_type = #tpu.core_type<tc>, window_params = [{transform_indices = @transform_0, window_bounds = array<i64: 1, 16, 16>}, {transform_indices = @transform_1, window_bounds = array<i64: 1, 64, 16>}, {pipeline_mode = #tpu.pipeline_mode<synchronous>, transform_indices = @transform_2, window_bounds = array<i64: 64, 32>}, {pipeline_mode = #tpu.pipeline_mode<synchronous>, transform_indices = @transform_3, window_bounds = array<i64: 144, 128>}, {pipeline_mode = #tpu.pipeline_mode<synchronous>, transform_indices = @transform_4, window_bounds = array<i64: 16, 128>}, {transform_indices = @transform_5, window_bounds = array<i64: 1, 16, 128>}]} {
    %c0 = arith.constant 0 : index
    %c0_0 = arith.constant 0 : index
    %0 = vector.load %arg5[%c0, %c0_0] : memref<16x128xf32, #tpu.memory_space<vmem>>, vector<16x128xf32>
    %c0_1 = arith.constant 0 : index
    %c0_2 = arith.constant 0 : index
    %c0_3 = arith.constant 0 : index
    %1 = vector.load %arg1[%c0_1, %c0_2, %c0_3] : memref<1x16x16xf32, #tpu.memory_space<vmem>>, vector<1x16x16xf32>
    %2 = vector.shape_cast %1 : vector<1x16x16xf32> to vector<16x16xf32>
    %c0_4 = arith.constant 0 : index
    %c0_5 = arith.constant 0 : index
    %c0_6 = arith.constant 0 : index
    %3 = vector.load %arg2[%c0_4, %c0_5, %c0_6] : memref<1x64x16xf32, #tpu.memory_space<vmem>>, vector<1x64x16xf32>
    %4 = vector.shape_cast %3 : vector<1x64x16xf32> to vector<64x16xf32>
    %c0_7 = arith.constant 0 : index
    %c0_8 = arith.constant 0 : index
    %5 = vector.load %arg3[%c0_7, %c0_8] : memref<64x32xf32, #tpu.memory_space<vmem>>, vector<64x32xf32>
    %c0_9 = arith.constant 0 : index
    %c0_10 = arith.constant 0 : index
    %6 = vector.load %arg4[%c0_9, %c0_10] : memref<144x128xbf16, #tpu.memory_space<vmem>>, vector<16x32xbf16>
    %7 = arith.truncf %2 : vector<16x16xf32> to vector<16x16xbf16>
    %cst = arith.constant dense<0.000000e+00> : vector<16x32xf32>
    %8 = tpu.matmul %7, %6, %cst {dimension_numbers = #tpu.dot_dimension_numbers<[1], [0], [0], [1], [0, 0, 1, 1], [], []>} : vector<16x16xbf16>, vector<16x32xbf16>, vector<16x32xf32> -> vector<16x32xf32>
    %9 = vector.extract_strided_slice %0 {offsets = [0, 0], sizes = [1, 32], strides = [1, 1]} : vector<16x128xf32> to vector<1x32xf32>
    %10 = vector.broadcast %9 : vector<1x32xf32> to vector<16x32xf32>
    %11 = arith.addf %8, %10 : vector<16x32xf32>
    %cst_11 = arith.constant dense<0.000000e+00> : vector<32xf32>
    %12 = vector.multi_reduction <add>, %11, %cst_11 [0] : vector<16x32xf32> to vector<32xf32>
    %13 = vector.shape_cast %12 : vector<32xf32> to vector<1x32xf32>
    %cst_12 = arith.constant 1.600000e+01 : f32
    %14 = vector.broadcast %cst_12 : f32 to vector<1x32xf32>
    %15 = arith.divf %13, %14 : vector<1x32xf32>
    %16 = vector.broadcast %15 : vector<1x32xf32> to vector<16x32xf32>
    %17 = arith.subf %11, %16 : vector<16x32xf32>
    %18 = arith.mulf %17, %17 : vector<16x32xf32>
    %cst_13 = arith.constant dense<0.000000e+00> : vector<32xf32>
    %19 = vector.multi_reduction <add>, %18, %cst_13 [0] : vector<16x32xf32> to vector<32xf32>
    %20 = vector.shape_cast %19 : vector<32xf32> to vector<1x32xf32>
    %cst_14 = arith.constant 1.600000e+01 : f32
    %21 = vector.broadcast %cst_14 : f32 to vector<1x32xf32>
    %22 = arith.divf %20, %21 : vector<1x32xf32>
    %23 = vector.broadcast %15 : vector<1x32xf32> to vector<16x32xf32>
    %24 = arith.subf %11, %23 : vector<16x32xf32>
    %cst_15 = arith.constant 9.99999974E-6 : f32
    %25 = vector.broadcast %cst_15 : f32 to vector<1x32xf32>
    %26 = arith.addf %22, %25 : vector<1x32xf32>
    %27 = math.rsqrt %26 : vector<1x32xf32>
    %28 = vector.broadcast %27 : vector<1x32xf32> to vector<16x32xf32>
    %29 = arith.mulf %24, %28 : vector<16x32xf32>
    %30 = vector.extract_strided_slice %0 {offsets = [1, 0], sizes = [1, 32], strides = [1, 1]} : vector<16x128xf32> to vector<1x32xf32>
    %31 = vector.broadcast %30 : vector<1x32xf32> to vector<16x32xf32>
    %32 = arith.mulf %29, %31 : vector<16x32xf32>
    %33 = vector.extract_strided_slice %0 {offsets = [2, 0], sizes = [1, 32], strides = [1, 1]} : vector<16x128xf32> to vector<1x32xf32>
    %34 = vector.broadcast %33 : vector<1x32xf32> to vector<16x32xf32>
    %35 = arith.addf %32, %34 : vector<16x32xf32>
    %c16 = arith.constant 16 : index
    %c0_16 = arith.constant 0 : index
    %36 = vector.load %arg4[%c16, %c0_16] : memref<144x128xbf16, #tpu.memory_space<vmem>>, vector<32x32xbf16>
    %37 = arith.truncf %35 : vector<16x32xf32> to vector<16x32xbf16>
    %cst_17 = arith.constant dense<0.000000e+00> : vector<16x32xf32>
    %38 = tpu.matmul %37, %36, %cst_17 {dimension_numbers = #tpu.dot_dimension_numbers<[1], [0], [0], [1], [0, 0, 1, 1], [], []>} : vector<16x32xbf16>, vector<32x32xbf16>, vector<16x32xf32> -> vector<16x32xf32>
    %39 = vector.extract_strided_slice %0 {offsets = [3, 0], sizes = [1, 32], strides = [1, 1]} : vector<16x128xf32> to vector<1x32xf32>
    %40 = vector.broadcast %39 : vector<1x32xf32> to vector<16x32xf32>
    %41 = arith.addf %38, %40 : vector<16x32xf32>
    %cst_18 = arith.constant 0.000000e+00 : f32
    %42 = vector.broadcast %cst_18 : f32 to vector<16x32xf32>
    %43 = arith.maximumf %41, %42 : vector<16x32xf32>
    %c48 = arith.constant 48 : index
    %c0_19 = arith.constant 0 : index
    %44 = vector.load %arg4[%c48, %c0_19] : memref<144x128xbf16, #tpu.memory_space<vmem>>, vector<32x128xbf16>
    %45 = arith.truncf %43 : vector<16x32xf32> to vector<16x32xbf16>
    %cst_20 = arith.constant dense<0.000000e+00> : vector<16x128xf32>
    %46 = tpu.matmul %45, %44, %cst_20 {dimension_numbers = #tpu.dot_dimension_numbers<[1], [0], [0], [1], [0, 0, 1, 1], [], []>} : vector<16x32xbf16>, vector<32x128xbf16>, vector<16x128xf32> -> vector<16x128xf32>
    %47 = vector.extract_strided_slice %0 {offsets = [4, 0], sizes = [1, 128], strides = [1, 1]} : vector<16x128xf32> to vector<1x128xf32>
    %48 = vector.broadcast %47 : vector<1x128xf32> to vector<16x128xf32>
    %49 = arith.addf %46, %48 : vector<16x128xf32>
    %50 = vector.extract_strided_slice %49 {offsets = [0, 0], sizes = [16, 32], strides = [1, 1]} : vector<16x128xf32> to vector<16x32xf32>
    %51 = vector.extract_strided_slice %49 {offsets = [0, 32], sizes = [16, 32], strides = [1, 1]} : vector<16x128xf32> to vector<16x32xf32>
    %52 = vector.extract_strided_slice %49 {offsets = [0, 64], sizes = [16, 32], strides = [1, 1]} : vector<16x128xf32> to vector<16x32xf32>
    %53 = vector.extract_strided_slice %49 {offsets = [0, 96], sizes = [16, 32], strides = [1, 1]} : vector<16x128xf32> to vector<16x32xf32>
    %54 = tpu.concatenate %50, %50, %50, %50 in 0 : vector<16x32xf32>, vector<16x32xf32>, vector<16x32xf32>, vector<16x32xf32> -> vector<64x32xf32>
    %55 = arith.mulf %54, %5 : vector<64x32xf32>
    %56 = arith.truncf %55 : vector<64x32xf32> to vector<64x32xbf16>
    %57 = arith.truncf %51 : vector<16x32xf32> to vector<16x32xbf16>
    %cst_21 = arith.constant dense<0.000000e+00> : vector<64x16xf32>
    %58 = tpu.matmul %56, %57, %cst_21 {dimension_numbers = #tpu.dot_dimension_numbers<[1], [1], [0], [0], [0, 0, 1, 0], [], []>} : vector<64x32xbf16>, vector<16x32xbf16>, vector<64x16xf32> -> vector<64x16xf32>
    %59 = arith.addf %58, %4 : vector<64x16xf32>
    %cst_22 = arith.constant dense<0xFF800000> : vector<64xf32>
    %60 = vector.multi_reduction <maximumf>, %59, %cst_22 [1] : vector<64x16xf32> to vector<64xf32>
    %61 = vector.shape_cast %60 : vector<64xf32> to vector<64x1xf32>
    %62 = vector.broadcast %61 : vector<64x1xf32> to vector<64x16xf32>
    %63 = arith.subf %59, %62 : vector<64x16xf32>
    %64 = math.exp %63 : vector<64x16xf32>
    %cst_23 = arith.constant dense<0.000000e+00> : vector<64xf32>
    %65 = vector.multi_reduction <add>, %64, %cst_23 [1] : vector<64x16xf32> to vector<64xf32>
    %66 = vector.shape_cast %65 : vector<64xf32> to vector<64x1xf32>
    %cst_24 = arith.constant 9.99999968E-21 : f32
    %67 = vector.broadcast %cst_24 : f32 to vector<64x1xf32>
    %68 = arith.maximumf %66, %67 : vector<64x1xf32>
    %69 = tpu.reciprocal %68 {approx = true} : vector<64x1xf32> -> vector<64x1xf32>
    %70 = vector.broadcast %69 : vector<64x1xf32> to vector<64x16xf32>
    %71 = arith.mulf %64, %70 : vector<64x16xf32>
    %72 = arith.truncf %71 : vector<64x16xf32> to vector<64x16xbf16>
    %73 = arith.truncf %52 : vector<16x32xf32> to vector<16x32xbf16>
    %cst_25 = arith.constant dense<0.000000e+00> : vector<64x32xf32>
    %74 = tpu.matmul %72, %73, %cst_25 {dimension_numbers = #tpu.dot_dimension_numbers<[1], [0], [0], [1], [0, 0, 1, 1], [], []>} : vector<64x16xbf16>, vector<16x32xbf16>, vector<64x32xf32> -> vector<64x32xf32>
    %75 = arith.mulf %74, %5 : vector<64x32xf32>
    %76 = vector.extract_strided_slice %75 {offsets = [0, 0], sizes = [16, 32], strides = [1, 1]} : vector<64x32xf32> to vector<16x32xf32>
    %77 = vector.extract_strided_slice %75 {offsets = [16, 0], sizes = [16, 32], strides = [1, 1]} : vector<64x32xf32> to vector<16x32xf32>
    %78 = arith.addf %76, %77 : vector<16x32xf32>
    %79 = vector.extract_strided_slice %75 {offsets = [32, 0], sizes = [16, 32], strides = [1, 1]} : vector<64x32xf32> to vector<16x32xf32>
    %80 = arith.addf %78, %79 : vector<16x32xf32>
    %81 = vector.extract_strided_slice %75 {offsets = [48, 0], sizes = [16, 32], strides = [1, 1]} : vector<64x32xf32> to vector<16x32xf32>
    %82 = arith.addf %80, %81 : vector<16x32xf32>
    %83 = vector.extract_strided_slice %0 {offsets = [6, 0], sizes = [1, 32], strides = [1, 1]} : vector<16x128xf32> to vector<1x32xf32>
    %84 = vector.extract_strided_slice %0 {offsets = [7, 0], sizes = [1, 32], strides = [1, 1]} : vector<16x128xf32> to vector<1x32xf32>
    %85 = vector.broadcast %83 : vector<1x32xf32> to vector<16x32xf32>
    %86 = arith.mulf %82, %85 : vector<16x32xf32>
    %87 = vector.broadcast %84 : vector<1x32xf32> to vector<16x32xf32>
    %88 = arith.mulf %53, %87 : vector<16x32xf32>
    %89 = arith.addf %86, %88 : vector<16x32xf32>
    %cst_26 = arith.constant dense<0.000000e+00> : vector<16xf32>
    %90 = vector.multi_reduction <add>, %89, %cst_26 [1] : vector<16x32xf32> to vector<16xf32>
    %91 = vector.shape_cast %90 : vector<16xf32> to vector<16x1xf32>
    %92 = arith.negf %91 : vector<16x1xf32>
    %93 = math.exp %92 : vector<16x1xf32>
    %cst_27 = arith.constant 1.000000e+00 : f32
    %94 = vector.broadcast %cst_27 : f32 to vector<16x1xf32>
    %95 = arith.addf %94, %93 : vector<16x1xf32>
    %96 = arith.divf %94, %95 : vector<16x1xf32>
    %97 = vector.broadcast %96 : vector<16x1xf32> to vector<16x32xf32>
    %98 = arith.mulf %97, %53 : vector<16x32xf32>
    %cst_28 = arith.constant 1.000000e+00 : f32
    %99 = vector.broadcast %cst_28 : f32 to vector<16x1xf32>
    %100 = arith.subf %99, %96 : vector<16x1xf32>
    %101 = vector.broadcast %100 : vector<16x1xf32> to vector<16x32xf32>
    %102 = arith.mulf %101, %82 : vector<16x32xf32>
    %103 = arith.addf %98, %102 : vector<16x32xf32>
    %c80 = arith.constant 80 : index
    %c0_29 = arith.constant 0 : index
    %104 = vector.load %arg4[%c80, %c0_29] : memref<144x128xbf16, #tpu.memory_space<vmem>>, vector<32x128xbf16>
    %105 = arith.truncf %103 : vector<16x32xf32> to vector<16x32xbf16>
    %cst_30 = arith.constant dense<0.000000e+00> : vector<16x128xf32>
    %106 = tpu.matmul %105, %104, %cst_30 {dimension_numbers = #tpu.dot_dimension_numbers<[1], [0], [0], [1], [0, 0, 1, 1], [], []>} : vector<16x32xbf16>, vector<32x128xbf16>, vector<16x128xf32> -> vector<16x128xf32>
    %107 = vector.extract_strided_slice %0 {offsets = [5, 0], sizes = [1, 128], strides = [1, 1]} : vector<16x128xf32> to vector<1x128xf32>
    %108 = vector.broadcast %107 : vector<1x128xf32> to vector<16x128xf32>
    %109 = arith.addf %106, %108 : vector<16x128xf32>
    %110 = vector.extract_strided_slice %109 {offsets = [0, 0], sizes = [16, 32], strides = [1, 1]} : vector<16x128xf32> to vector<16x32xf32>
    %111 = vector.extract_strided_slice %109 {offsets = [0, 32], sizes = [16, 32], strides = [1, 1]} : vector<16x128xf32> to vector<16x32xf32>
    %112 = vector.extract_strided_slice %109 {offsets = [0, 64], sizes = [16, 32], strides = [1, 1]} : vector<16x128xf32> to vector<16x32xf32>
    %113 = vector.extract_strided_slice %109 {offsets = [0, 96], sizes = [16, 32], strides = [1, 1]} : vector<16x128xf32> to vector<16x32xf32>
    %114 = tpu.concatenate %110, %110, %110, %110 in 0 : vector<16x32xf32>, vector<16x32xf32>, vector<16x32xf32>, vector<16x32xf32> -> vector<64x32xf32>
    %115 = arith.mulf %114, %5 : vector<64x32xf32>
    %116 = arith.truncf %115 : vector<64x32xf32> to vector<64x32xbf16>
    %117 = arith.truncf %111 : vector<16x32xf32> to vector<16x32xbf16>
    %cst_31 = arith.constant dense<0.000000e+00> : vector<64x16xf32>
    %118 = tpu.matmul %116, %117, %cst_31 {dimension_numbers = #tpu.dot_dimension_numbers<[1], [1], [0], [0], [0, 0, 1, 0], [], []>} : vector<64x32xbf16>, vector<16x32xbf16>, vector<64x16xf32> -> vector<64x16xf32>
    %119 = arith.addf %118, %4 : vector<64x16xf32>
    %cst_32 = arith.constant dense<0xFF800000> : vector<64xf32>
    %120 = vector.multi_reduction <maximumf>, %119, %cst_32 [1] : vector<64x16xf32> to vector<64xf32>
    %121 = vector.shape_cast %120 : vector<64xf32> to vector<64x1xf32>
    %122 = vector.broadcast %121 : vector<64x1xf32> to vector<64x16xf32>
    %123 = arith.subf %119, %122 : vector<64x16xf32>
    %124 = math.exp %123 : vector<64x16xf32>
    %cst_33 = arith.constant dense<0.000000e+00> : vector<64xf32>
    %125 = vector.multi_reduction <add>, %124, %cst_33 [1] : vector<64x16xf32> to vector<64xf32>
    %126 = vector.shape_cast %125 : vector<64xf32> to vector<64x1xf32>
    %cst_34 = arith.constant 9.99999968E-21 : f32
    %127 = vector.broadcast %cst_34 : f32 to vector<64x1xf32>
    %128 = arith.maximumf %126, %127 : vector<64x1xf32>
    %129 = tpu.reciprocal %128 {approx = true} : vector<64x1xf32> -> vector<64x1xf32>
    %130 = vector.broadcast %129 : vector<64x1xf32> to vector<64x16xf32>
    %131 = arith.mulf %124, %130 : vector<64x16xf32>
    %132 = arith.truncf %131 : vector<64x16xf32> to vector<64x16xbf16>
    %133 = arith.truncf %112 : vector<16x32xf32> to vector<16x32xbf16>
    %cst_35 = arith.constant dense<0.000000e+00> : vector<64x32xf32>
    %134 = tpu.matmul %132, %133, %cst_35 {dimension_numbers = #tpu.dot_dimension_numbers<[1], [0], [0], [1], [0, 0, 1, 1], [], []>} : vector<64x16xbf16>, vector<16x32xbf16>, vector<64x32xf32> -> vector<64x32xf32>
    %135 = arith.mulf %134, %5 : vector<64x32xf32>
    %136 = vector.extract_strided_slice %135 {offsets = [0, 0], sizes = [16, 32], strides = [1, 1]} : vector<64x32xf32> to vector<16x32xf32>
    %137 = vector.extract_strided_slice %135 {offsets = [16, 0], sizes = [16, 32], strides = [1, 1]} : vector<64x32xf32> to vector<16x32xf32>
    %138 = arith.addf %136, %137 : vector<16x32xf32>
    %139 = vector.extract_strided_slice %135 {offsets = [32, 0], sizes = [16, 32], strides = [1, 1]} : vector<64x32xf32> to vector<16x32xf32>
    %140 = arith.addf %138, %139 : vector<16x32xf32>
    %141 = vector.extract_strided_slice %135 {offsets = [48, 0], sizes = [16, 32], strides = [1, 1]} : vector<64x32xf32> to vector<16x32xf32>
    %142 = arith.addf %140, %141 : vector<16x32xf32>
    %143 = vector.extract_strided_slice %0 {offsets = [8, 0], sizes = [1, 32], strides = [1, 1]} : vector<16x128xf32> to vector<1x32xf32>
    %144 = vector.extract_strided_slice %0 {offsets = [9, 0], sizes = [1, 32], strides = [1, 1]} : vector<16x128xf32> to vector<1x32xf32>
    %145 = vector.broadcast %143 : vector<1x32xf32> to vector<16x32xf32>
    %146 = arith.mulf %142, %145 : vector<16x32xf32>
    %147 = vector.broadcast %144 : vector<1x32xf32> to vector<16x32xf32>
    %148 = arith.mulf %113, %147 : vector<16x32xf32>
    %149 = arith.addf %146, %148 : vector<16x32xf32>
    %cst_36 = arith.constant dense<0.000000e+00> : vector<16xf32>
    %150 = vector.multi_reduction <add>, %149, %cst_36 [1] : vector<16x32xf32> to vector<16xf32>
    %151 = vector.shape_cast %150 : vector<16xf32> to vector<16x1xf32>
    %152 = arith.negf %151 : vector<16x1xf32>
    %153 = math.exp %152 : vector<16x1xf32>
    %cst_37 = arith.constant 1.000000e+00 : f32
    %154 = vector.broadcast %cst_37 : f32 to vector<16x1xf32>
    %155 = arith.addf %154, %153 : vector<16x1xf32>
    %156 = arith.divf %154, %155 : vector<16x1xf32>
    %157 = vector.broadcast %156 : vector<16x1xf32> to vector<16x32xf32>
    %158 = arith.mulf %157, %113 : vector<16x32xf32>
    %cst_38 = arith.constant 1.000000e+00 : f32
    %159 = vector.broadcast %cst_38 : f32 to vector<16x1xf32>
    %160 = arith.subf %159, %156 : vector<16x1xf32>
    %161 = vector.broadcast %160 : vector<16x1xf32> to vector<16x32xf32>
    %162 = arith.mulf %161, %142 : vector<16x32xf32>
    %163 = arith.addf %158, %162 : vector<16x32xf32>
    %c112 = arith.constant 112 : index
    %c0_39 = arith.constant 0 : index
    %164 = vector.load %arg4[%c112, %c0_39] : memref<144x128xbf16, #tpu.memory_space<vmem>>, vector<32x128xbf16>
    %165 = arith.truncf %163 : vector<16x32xf32> to vector<16x32xbf16>
    %cst_40 = arith.constant dense<0.000000e+00> : vector<16x128xf32>
    %166 = tpu.matmul %165, %164, %cst_40 {dimension_numbers = #tpu.dot_dimension_numbers<[1], [0], [0], [1], [0, 0, 1, 1], [], []>} : vector<16x32xbf16>, vector<32x128xbf16>, vector<16x128xf32> -> vector<16x128xf32>
    %167 = vector.extract_strided_slice %0 {offsets = [10, 0], sizes = [1, 128], strides = [1, 1]} : vector<16x128xf32> to vector<1x128xf32>
    %168 = vector.broadcast %167 : vector<1x128xf32> to vector<16x128xf32>
    %169 = arith.addf %166, %168 : vector<16x128xf32>
    %c0_41 = arith.constant 0 : index
    %c0_42 = arith.constant 0 : index
    %c0_43 = arith.constant 0 : index
    %170 = vector.load %arg6[%c0_41, %c0_42, %c0_43] : memref<1x16x128xf32, #tpu.memory_space<vmem>>, vector<1x16x128xf32>
    %171 = vector.shape_cast %170 : vector<1x16x128xf32> to vector<16x128xf32>
    %172 = vector.shape_cast %169 : vector<16x128xf32> to vector<1x16x128xf32>
    tpu.vector_store %arg6[%c0_41, %c0_42, %c0_43], %172 {strides = array<i32>} : memref<1x16x128xf32, #tpu.memory_space<vmem>>, vector<1x16x128xf32>,
    return
  }
  func.func @transform_0(%arg0: i32) -> (i32, i32, i32) {
    %c0_i32 = arith.constant 0 : i32
    %c0_i32_0 = arith.constant 0 : i32
    %c0_i32_1 = arith.constant 0 : i32
    return %arg0, %c0_i32, %c0_i32_0 : i32, i32, i32
  }
  func.func @transform_1(%arg0: i32) -> (i32, i32, i32) {
    %c0_i32 = arith.constant 0 : i32
    %c0_i32_0 = arith.constant 0 : i32
    %c0_i32_1 = arith.constant 0 : i32
    return %arg0, %c0_i32, %c0_i32_0 : i32, i32, i32
  }
  func.func @transform_2(%arg0: i32) -> (i32, i32) {
    %c0_i32 = arith.constant 0 : i32
    %c0_i32_0 = arith.constant 0 : i32
    %c0_i32_1 = arith.constant 0 : i32
    return %c0_i32, %c0_i32_0 : i32, i32
  }
  func.func @transform_3(%arg0: i32) -> (i32, i32) {
    %c0_i32 = arith.constant 0 : i32
    %c0_i32_0 = arith.constant 0 : i32
    %c0_i32_1 = arith.constant 0 : i32
    return %c0_i32, %c0_i32_0 : i32, i32
  }
  func.func @transform_4(%arg0: i32) -> (i32, i32) {
    %c0_i32 = arith.constant 0 : i32
    %c0_i32_0 = arith.constant 0 : i32
    %c0_i32_1 = arith.constant 0 : i32
    return %c0_i32, %c0_i32_0 : i32, i32
  }
  func.func @transform_5(%arg0: i32) -> (i32, i32, i32) {
    %c0_i32 = arith.constant 0 : i32
    %c0_i32_0 = arith.constant 0 : i32
    %c0_i32_1 = arith.constant 0 : i32
    return %arg0, %c0_i32, %c0_i32_0 : i32, i32, i32
  }
}

</mosaic_0001>

<bundles_post_ra>
// kernel: tpu_custom_call.1
= control target key start
LH: loop header
LB: loop body
LE: loop exit
PB: predicated region body
PF: predicated region fallthrough
CT: control target
= control target key end

     0   :  { %10 = vsyncpa [#allocation3], 0  ;;  %s2288_s0 = inlined_call_operand.vmem [shape: f32[2,16,16], index: 0, kind: input, shape index: {}]   ;;  %s2289_s1 = inlined_call_operand.vmem [shape: f32[2,64,16], index: 1, kind: input, shape index: {}]   ;;  %s2290_s2 = inlined_call_operand.vmem [shape: f32[64,32], index: 2, kind: input, shape index: {}]   ;;  %s2291_s3 = inlined_call_operand.vmem [shape: bf16[144,128], index: 3, kind: input, shape index: {}]   ;;  %s2292_s4 = inlined_call_operand.vmem [shape: f32[16,128], index: 4, kind: input, shape index: {}]   ;;  %s2293_s5 = inlined_call_operand.hbm [shape: f32[2,16,128], index: 5, kind: output, shape index: {}]  }
   0x1   :  { %12 = vsyncpa [#allocation3 + $0x1], 0  ;;  %s1826_s18 = smov 0   ;;  %s1828_s19 = smov 0  }
   0x2   :  { %s1830_s20 = smov 0   ;;  %s1832_s21 = smov 0  }
   0x3 LB: > { %s1847_s22 = sadd.s32 4294967295, %s1786_s21   ;;  %s1422_s23 = sadd.s32 4294967294, %s1786_s21   ;;  %s1786_s21 = sphi %s1832_s21, %s2299_s21   ;;  %s1782_s20 = sphi %s1830_s20, %s2298_s20   ;;  %s1778_s19 = sphi %s1828_s19, %s2297_s19   ;;  %s1774_s18 = sphi %s1826_s18, %s2296_s18  }
   0x4   : > { %s1851_s24 = sadd.s32 1, %s1786_s21   ;;  %s140_s25 = sadd.s32 1, %s1782_s20 }
   0x5   : > { %s137_s26 = ssub.s32 %s1786_s21, %s1851_s24  ;;  %p150_p0 = scmp.ne.s32.totalorder %s1782_s20, %s1778_s19 }
   0x6   : > { %p138_p1 = scmp.eq.s32.totalorder %s137_s26, 0  ;;  %p151_p2 = scmp.eq.s32.totalorder %s1847_s22, 1 }
   0x7   : > { %p156_p3 = scmp.ne.s32.totalorder %s1778_s19, %s1774_s18  ;;  %p157_p4 = scmp.eq.s32.totalorder %s1422_s23, 1 }
   0x8   : > { %s1862_s27 = scalar_select %p138_p1, %s1782_s20, %s140_s25  }
   0x9   : > { %p1864_p5 = por %p151_p2, %p150_p0  ;;  %p1868_p6 = por %p157_p4, %p156_p3 }
   0xa   : > { %p1425_p7 = scmp.ge.s32.totalorder %s1786_s21, 1  ;;  %p200_p8 = scmp.lt.s32.totalorder %s1786_s21, 3 }
   0xc   : > { %p201_p9 = pnand %p1425_p7, %p200_p8 }
   0xd   : > { %v1633_v0 = vld [vmem:[%s2291_s3] sm:$0xff] (!%p201_p9)   ;;  %v1788_v1 = vmov (!%p201_p9), 0.0   ;;  %p233_p10 = scmp.lt.s32.totalorder (!%p201_p9), %s1847_s22, 1  ;;  %vm1789_vm0 = vmmov (!%p201_p9), 0   ;;  %vm277_vm1 = vcmask (!%p201_p9), 130048   ;;  %v1634_v5 = vld [vmem:[%s2291_s3 + $0x8] sm:$0xff] (!%p201_p9)   ;;  %v267_v7 = vlaneseq (!%p201_p9) }
   0xe   : > { %204 = sbr.rel (%p201_p9) target bundleno = 3808 (0xee0), region = 40  ;;  %1507 = vmatprep.subr.bf16.mxu0 (!%p201_p9), %v1788_v1  ;;  %1513 = vmatprep.subr.bf16.mxu1 (!%p201_p9), %v1788_v1  ;;  %v1635_v6 = vld [vmem:[%s2291_s3 + $0x10] sm:$0xff] (!%p201_p9)   ;;  %v1908_v10 = vld [vmem:[%s2292_s4] sm:$0xff] (!%p201_p9)  ;;  %vm322_vm2 = vcmask (!%p201_p9), 261120   ;;  %v1636_v55 = vld [vmem:[%s2291_s3 + $0x18] sm:$0xff] (!%p201_p9)   ;;  %s1792_s14 = smov (!%p201_p9), 32  }
   0xf   : > { %1508 = vmatpush3.bf16.msra.mxu0 (!%p201_p9), %v1633_v0  ;;  %1509 = vmatprep.mubr.msk.bf16.mxu0 (!%p201_p9), %vm1789_vm0, %v1788_v1  ;;  %v1902_v8 = vshrl.u32 (!%p201_p9), %v267_v7, 7  ;;  %v1637_v56 = vld [vmem:[%s2291_s3 + $0x20] sm:$0xff] (!%p201_p9)   ;;  %s230_s10 = sand.u32 (!%p201_p9), 1, %s1778_s19   ;;  %s1793_s23 = smov (!%p201_p9), [#allocation2]  }
  0x10   : > { %1517 = vmatprep.mubr.msk.bf16.mxu1 (!%p201_p9), %vm1789_vm0, %v1788_v1  ;;  %1521 = vmatprep.subr.bf16.mxu0 (!%p201_p9), %v1788_v1  ;;  %s1426_s12 = sshll.u32 (!%p201_p9), %s230_s10, 4  ;;  %s2247_s17 = scalar_lea.sflag (!%p201_p9), [#allocation3], %s230_s10 }
  0x11   : > { %1514 = vmatpush3.bf16.msra.mxu1 (!%p201_p9), %v1634_v5  ;;  %v269_v9 = vsub.s32 (!%p201_p9), 0, %v1902_v8  ;;  %v354_v43 = vsub.s32 (!%p201_p9), 1, %v1902_v8  ;;  %v360_v44 = vsub.s32 (!%p201_p9), 2, %v1902_v8  ;;  %v371_v57 = vsub.s32 (!%p201_p9), 3, %v1902_v8  ;;  %s1728_s25 = sshll.u32 (!%p201_p9), %s1793_s23, 4  ;;  %s1729_s25 = int_to_ptr.vmem [resolvable:$false] %s1728_s25 }
  0x12   : > { %1515 = vmatprep.subr.bf16.mxu1 (!%p201_p9), %v1788_v1  ;;  %v438_v5 = vsub.s32 (!%p201_p9), 4, %v1902_v8  ;;  %s1730_s26 = scalar_lea.vmem (!%p201_p9), %s1729_s25, 512 }
  0x13   : > { %v270_v11 = vrot.slane (!%p201_p9), %v1908_v10, %v269_v9  ;;  %v355_v45 = vrot.slane (!%p201_p9), %v1908_v10, %v354_v43  ;;  %v361_v49 = vrot.slane (!%p201_p9), %v1908_v10, %v360_v44  ;;  %v372_v58 = vrot.slane (!%p201_p9), %v1908_v10, %v371_v57 }
  0x15   : > { %s1883_s7 = scalar_select %p233_p10, %s1847_s22, 1  ;;  %1516 = vmatpush3.bf16.msra.mxu1 %v1635_v6  ;;  %v439_v6 = vrot.slane %v1908_v10, %v438_v5 }
  0x17   : > { %s1470_s8 = sshll.u32 %s1883_s7, 4  ;;  %s1471_s9 = sshll.u32 %s1883_s7, 6 }
  0x18   : > { %s237_s11 = scalar_lea.vmem %s2288_s0, %s1470_s8  ;;  %s2017_s13 = scalar_lea.vmem %s2289_s1, %s1471_s9 }
  0x19   : > { %v246_v2 = vld [vmem:[%s237_s11] sm:$0xff]  ;;  %v247_v3 = vld [vmem:[%s237_s11 + $0x8] sm:$0xff]  ;;  %s1790_s11 = smov 96   ;;  %s1791_s7 = smov 64  }
  0x1a   : > { %v266_v4 = vpack.c.bf16 %v247_v3, %v246_v2 }
  0x1c   : > { %1510 = vmatmul.mubr.msk.bf16.vlgmr.msra.gmra.mrb[0].mxu0 %vm277_vm1, %v266_v4 }
  0x1d   : > { %1525 = vmatprep.mubr.msk.bf16.mxu0 %vm1789_vm0, %v1788_v1  ;;  %1522 = vmatpush3.bf16.msra.mxu0 %v1636_v55 }
  0x1e   : > { %1523 = vmatprep.subr.bf16.mxu0 %v1788_v1 }
  0x21   : > { %1524 = vmatpush3.bf16.msra.mxu0 %v1637_v56  ;;  %v2039_v56 = vld [vmem:[%s2017_s13 + $0x30] sm:$0xff] }
  0xef   : > { %v315_v12 = vpop.f32.mrb[0].mxu0 }
  0xf0   : > { %v316_v13 = vadd.f32 %v315_v12, %v270_v11  ;;  %v1511_v14 = vpop.f32.mrb[1].mxu0 }
  0xf1   : > { %v318_v15 = vpop.f32.mrb[2].mxu0  ;;  %v1943_v14 = vld [vmem:[%s2290_s2] sm:$0xff] }
  0xf2   : > { %v319_v16 = vadd.f32 %v318_v15, %v270_v11  ;;  %v1512_v17 = vpop.f32.mrb[3].mxu0  ;;  %v323_v18 = vsel %vm322_vm2, %v316_v13, 0.0  ;;  %v1948_v15 = vld [vmem:[%s2290_s2 + $0x8] sm:$0xff] }
  0xf4   : > { %v324_v19 = vsel %vm322_vm2, %v319_v16, 0.0 }
  0xf5   : > { %v325_v20 = vadd.f32 %v324_v19, %v323_v18 }
  0xf7   : > { %v326_v21 = vrot.slane %v325_v20, 4 }
  0xf9   : > { %v327_v22 = vadd.f32 %v326_v21, %v325_v20 }
  0xfb   : > { %v328_v23 = vrot.slane %v327_v22, 2 }
  0xfd   : > { %v329_v24 = vadd.f32 %v328_v23, %v327_v22  ;;  %v1966_v23 = vld [vmem:[%s2290_s2 + $0x18] sm:$0xff] }
  0xff   : > { %v330_v25 = vrot.slane %v329_v24, 1 }
 0x101   : > { %v331_v26 = vadd.f32 %v330_v25, %v329_v24  ;;  %v1973_v25 = vld [vmem:[%s2290_s2 + $0x28] sm:$0xff] }
 0x103   : > { %v333_v27 = vmul.f32 0.0625, %v331_v26  ;;  %v1978_v26 = vld [vmem:[%s2290_s2 + $0x10] sm:$0xff] }
 0x105   : > { %v334_v28 = vsub.f32 %v316_v13, %v333_v27  ;;  %v335_v29 = vsub.f32 %v319_v16, %v333_v27 }
 0x107   : > { %v336_v30 = vmul.f32 %v334_v28, %v334_v28  ;;  %v337_v31 = vmul.f32 %v335_v29, %v335_v29 }
 0x109   : > { %v338_v32 = vsel %vm322_vm2, %v336_v30, 0.0  ;;  %v339_v33 = vsel %vm322_vm2, %v337_v31, 0.0 }
 0x10a   : > { %v340_v34 = vadd.f32 %v339_v33, %v338_v32 }
 0x10c   : > { %v341_v35 = vrot.slane %v340_v34, 4 }
 0x10e   : > { %v342_v36 = vadd.f32 %v341_v35, %v340_v34  ;;  %v1997_v34 = vld [vmem:[%s2290_s2 + $0x38] sm:$0xff]  ;;  %v2004_v35 = vld [vmem:[%s2290_s2 + $0x30] sm:$0xff] }
 0x110   : > { %v343_v37 = vrot.slane %v342_v36, 2 }
 0x112   : > { %v344_v38 = vadd.f32 %v343_v37, %v342_v36 }
 0x114   : > { %v345_v39 = vrot.slane %v344_v38, 1 }
 0x116   : > { %v346_v40 = vadd.f32 %v345_v39, %v344_v38  ;;  %v2020_v39 = vld [vmem:[%s2017_s13 + $0x10] sm:$0xff] }
 0x118   : > { %v347_v41 = vmul.f32 0.0625, %v346_v40  ;;  %v2023_v40 = vld [vmem:[%s2017_s13] sm:$0xff] }
 0x11a   : > { %v348_v42 = vadd.f32 1e-05, %v347_v41 }
 0x11c   : > { %1642 = vrsqrt.f32 %v348_v42  ;;  %v2026_v42 = vld [vmem:[%s2017_s13 + $0x18] sm:$0xff] }
 0x126   : > { %v1643_v46 = vpop.eup %1642 }
 0x127   : > { %v350_v47 = vmul.f32 %v1643_v46, %v334_v28  ;;  %v351_v48 = vmul.f32 %v1643_v46, %v335_v29  ;;  %v1985_v28 = vld [vmem:[%s2290_s2 + $0x20] sm:$0xff] }
 0x129   : > { %v356_v50 = vmul.f32 %v355_v45, %v350_v47  ;;  %v357_v51 = vmul.f32 %v355_v45, %v351_v48 }
 0x12b   : > { %v363_v52 = vadd.f32 %v361_v49, %v357_v51  ;;  %v362_v53 = vadd.f32 %v361_v49, %v356_v50 }
 0x12d   : > { %v368_v54 = vpack.c.bf16 %v363_v52, %v362_v53  ;;  %v2033_v52 = vld [vmem:[%s2017_s13 + $0x8] sm:$0xff] }
 0x12f   : > { %1518 = vmatmul.mubr.msk.bf16.vlgmr.msra.gmra.mrb[0].mxu1 %vm322_vm2, %v368_v54 }
 0x202   : > { %v422_v59 = vpop.f32.mrb[0].mxu1 }
 0x203   : > { %v423_v60 = vadd.f32 %v422_v59, %v372_v58  ;;  %v1519_v61 = vpop.f32.mrb[1].mxu1 }
 0x204   : > { %v425_v62 = vpop.f32.mrb[2].mxu1 }
 0x205   : > { %v426_v63 = vadd.f32 %v425_v62, %v372_v58  ;;  %v1520_v0 = vpop.f32.mrb[3].mxu1  ;;  %v429_v2 = vmax.f32 %v423_v60, 0.0 }
 0x207   : > { %v430_v3 = vmax.f32 %v426_v63, 0.0  ;;  %v2044_v63 = vld [vmem:[%s2017_s13 + $0x20] sm:$0xff] }
 0x209   : > { %v435_v4 = vpack.c.bf16 %v430_v3, %v429_v2  ;;  %v2049_v3 = vld [vmem:[%s2017_s13 + $0x28] sm:$0xff] }
 0x20b   : > { %1526 = vmatmul.mubr.msk.bf16.vlgmr.msra.gmra.mrb[4].mxu0 %vm322_vm2, %v435_v4 }
 0x2de   : > { %v489_v7 = vpop.f32.mrb[4].mxu0 }
 0x2df   : > { %v1938_v11 = vadd.f32 %v489_v7, %v439_v6  ;;  %v1527_v12 = vpop.f32.mrb[5].mxu0 }
 0x2e0   : > { %v492_v13 = vpop.f32.mrb[6].mxu0 }
 0x2e1   : > { %v1950_v16 = vadd.f32 %v492_v13, %v439_v6  ;;  %v1528_v17 = vpop.f32.mrb[7].mxu0  ;;  %v496_v19 = vmul.f32 %v1938_v11, %v1943_v14  ;;  %v498_v30 = vmul.f32 %v1938_v11, %v1978_v26  ;;  %v500_v31 = vmul.f32 %v1938_v11, %v1985_v28  ;;  %v2054_v6 = vld [vmem:[%s2017_s13 + $0x38] sm:$0xff] }
 0x2e2   : > { %v502_v37 = vmul.f32 %v1938_v11, %v2004_v35 }
 0x2e3   : > { %v1954_v18 = vpack.c.bf16 %v1950_v16, %v1938_v11  ;;  %v497_v20 = vmul.f32 %v1950_v16, %v1948_v15  ;;  %v499_v27 = vmul.f32 %v1950_v16, %v1966_v23  ;;  %v501_v29 = vmul.f32 %v1950_v16, %v1973_v25 }
 0x2e4   : > { %v503_v36 = vmul.f32 %v1950_v16, %v1997_v34 }
 0x2e5   : > { %510 = vrot.lane.b32.xlu0 %v1954_v18, %s1790_s11  ;;  %v504_v21 = vpack.c.bf16 %v497_v20, %v496_v19  ;;  %v505_v32 = vpack.c.bf16 %v499_v27, %v498_v30  ;;  %v506_v33 = vpack.c.bf16 %v501_v29, %v500_v31 }
 0x2e6   : > { %v507_v38 = vpack.c.bf16 %v503_v36, %v502_v37 }
 0x2e7   : > { %1531 = vmatprep.mubr.msk.bf16.mxu1 %vm322_vm2, %v504_v21 }
 0x357   : > { %v511_v22 = vpop.permute.xlu0 %510 }
 0x358   : > { %v525_v24 = vsel %vm322_vm2, %v511_v22, 0  ;;  %1585 = vmatprep.subr.msk.bf16.mxu1 %vm322_vm2, %v511_v22 }
 0x359   : > { %1530 = vmatpush3.bf16.xpose.msra.mxu1 %v525_v24 }
 0x35a   : > { %1549 = vmatprep.subr.bf16.mxu1 %v1788_v1 }
 0x360   : > { %1532 = vmatmul.mubr.msk.bf16.vlgmr.msra.gmra.mrb[4].mxu1 %vm322_vm2, %v505_v32 }
 0x361   : > { %1535 = vmatprep.mubr.msk.bf16.mxu1 %vm322_vm2, %v506_v33 }
 0x368   : > { %1536 = vmatmul.mubr.msk.bf16.gmra.mrb[8].mxu1 %vm322_vm2, %v507_v38 }
 0x369   : > { %1553 = vmatprep.mubr.msk.bf16.mxu1 %vm1789_vm0, %v1788_v1 }
 0x433   : > { %v1533_v41 = vpop.f32.mrb[4].mxu1 }
 0x434   : > { %v570_v45 = vadd.f32 %v1533_v41, %v2020_v39  ;;  %v561_v46 = vpop.f32.mrb[5].mxu1 }
 0x435   : > { %v562_v47 = vadd.f32 %v561_v46, %v2023_v40  ;;  %v1534_v48 = vpop.f32.mrb[6].mxu1 }
 0x436   : > { %v573_v49 = vadd.f32 %v1534_v48, %v2026_v42  ;;  %v564_v50 = vpop.f32.mrb[7].mxu1  ;;  %v598_v51 = vsel %vm277_vm1, %v570_v45, -inf }
 0x437   : > { %599 = vmax.xlane.f32.xlu1 %v598_v51  ;;  %v592_v53 = vsel %vm277_vm1, %v562_v47, -inf  ;;  %v565_v54 = vadd.f32 %v564_v50, %v2033_v52 }
 0x438   : > { %593 = vmax.xlane.f32.xlu0 %v592_v53  ;;  %v601_v55 = vsel %vm277_vm1, %v573_v49, -inf }
 0x439   : > { %v595_v62 = vsel %vm277_vm1, %v565_v54, -inf }
 0x43b   : > { %602 = vmax.xlane.f32.xlu1 %v601_v55  ;;  %v1537_v57 = vpop.f32.mrb[8].mxu1 }
 0x43c   : > { %v577_v58 = vpop.f32.mrb[9].mxu1  ;;  %v586_v60 = vadd.f32 %v1537_v57, %v2039_v56 }
 0x43d   : > { %v1538_v59 = vpop.f32.mrb[10].mxu1  ;;  %v578_v0 = vadd.f32 %v577_v58, %v2044_v63 }
 0x43e   : > { %v580_v61 = vpop.f32.mrb[11].mxu1  ;;  %v610_v2 = vsel %vm277_vm1, %v586_v60, -inf  ;;  %v589_v7 = vadd.f32 %v1538_v59, %v2054_v6 }
 0x43f   : > { %596 = vmax.xlane.f32.xlu1 %v595_v62  ;;  %v581_v4 = vadd.f32 %v580_v61, %v2049_v3  ;;  %v604_v5 = vsel %vm277_vm1, %v578_v0, -inf }
 0x440   : > { %v613_v13 = vsel %vm277_vm1, %v589_v7, -inf }
 0x441   : > { %v607_v12 = vsel %vm277_vm1, %v581_v4, -inf }
 0x443   : > { %611 = vmax.xlane.f32.xlu1 %v610_v2 }
 0x447   : > { %605 = vmax.xlane.f32.xlu1 %v604_v5 }
 0x44b   : > { %608 = vmax.xlane.f32.xlu1 %v607_v12 }
 0x44f   : > { %614 = vmax.xlane.f32.xlu1 %v613_v13 }
 0x4c4   : > { %v600_v17 = vpop.xlane.xlu1 %599 }
 0x4c5   : > { %v618_v19 = vsub.f32 %v570_v45, %v600_v17  ;;  %v594_v20 = vpop.xlane.xlu0 %593 }
 0x4c6   : > { %v616_v21 = vsub.f32 %v562_v47, %v594_v20 }
 0x4c7   : > { %v628_v22 = vmul.f32 1.442695, %v618_v19  ;;  %v794_v19 = vsub.s32 7, %v1902_v8 }
 0x4c8   : > { %v624_v24 = vmul.f32 1.442695, %v616_v21  ;;  %v603_v27 = vpop.xlane.xlu1 %602 }
 0x4c9   : > { %1644 = vpow2.f32 %v628_v22  ;;  %v619_v29 = vsub.f32 %v573_v49, %v603_v27  ;;  %v795_v20 = vrot.slane %v1908_v10, %v794_v19 }
 0x4ca   : > { %1646 = vpow2.f32 %v624_v24 }
 0x4cb   : > { %v630_v32 = vmul.f32 1.442695, %v619_v29 }
 0x4cc   : > { %v597_v30 = vpop.xlane.xlu1 %596 }
 0x4cd   : > { %v617_v31 = vsub.f32 %v565_v54, %v597_v30 }
 0x4cf   : > { %v626_v33 = vmul.f32 1.442695, %v617_v31 }
 0x4d0   : > { %v612_v36 = vpop.xlane.xlu1 %611 }
 0x4d1   : > { %1648 = vpow2.f32 %v626_v33  ;;  %v622_v37 = vsub.f32 %v586_v60, %v612_v36 }
 0x4d2   : > { %1650 = vpow2.f32 %v630_v32 }
 0x4d3   : > { %v2059_v38 = vpop.eup %1644  ;;  %v636_v41 = vmul.f32 1.442695, %v622_v37 }
 0x4d4   : > { %v2061_v45 = vpop.eup %1646  ;;  %v606_v46 = vpop.xlane.xlu1 %605  ;;  %v646_v47 = vsel %vm277_vm1, %v2059_v38, 0.0 }
 0x4d5   : > { %1652 = vpow2.f32 %v636_v41  ;;  %v620_v48 = vsub.f32 %v578_v0, %v606_v46  ;;  %647 = vadd.xlane.f32.xlu0 %v646_v47  ;;  %v640_v49 = vsel %vm277_vm1, %v2061_v45, 0.0 }
 0x4d6   : > { %641 = vadd.xlane.f32.xlu1 %v640_v49 }
 0x4d7   : > { %v632_v50 = vmul.f32 1.442695, %v620_v48 }
 0x4d8   : > { %v609_v51 = vpop.xlane.xlu1 %608 }
 0x4d9   : > { %1654 = vpow2.f32 %v632_v50  ;;  %v621_v53 = vsub.f32 %v581_v4, %v609_v51 }
 0x4db   : > { %v1649_v54 = vpop.eup %1648  ;;  %v634_v55 = vmul.f32 1.442695, %v621_v53 }
 0x4dc   : > { %v615_v57 = vpop.xlane.xlu1 %614  ;;  %v643_v58 = vsel %vm277_vm1, %v1649_v54, 0.0  ;;  %v1651_v59 = vpop.eup %1650 }
 0x4dd   : > { %1656 = vpow2.f32 %v634_v55  ;;  %v623_v60 = vsub.f32 %v589_v7, %v615_v57  ;;  %644 = vadd.xlane.f32.xlu1 %v643_v58  ;;  %v649_v2 = vsel %vm277_vm1, %v1651_v59, 0.0 }
 0x4df   : > { %v2068_v61 = vpop.eup %1652  ;;  %v638_v62 = vmul.f32 1.442695, %v623_v60 }
 0x4e0   : > { %v658_v0 = vsel %vm277_vm1, %v2068_v61, 0.0 }
 0x4e1   : > { %1658 = vpow2.f32 %v638_v62  ;;  %659 = vadd.xlane.f32.xlu0 %v658_v0  ;;  %650 = vadd.xlane.f32.xlu1 %v649_v2 }
 0x4e3   : > { %v1655_v4 = vpop.eup %1654 }
 0x4e4   : > { %v652_v5 = vsel %vm277_vm1, %v1655_v4, 0.0 }
 0x4e5   : > { %653 = vadd.xlane.f32.xlu0 %v652_v5 }
 0x4e7   : > { %v1657_v12 = vpop.eup %1656 }
 0x4e8   : > { %v655_v13 = vsel %vm277_vm1, %v1657_v12, 0.0 }
 0x4e9   : > { %656 = vadd.xlane.f32.xlu1 %v655_v13 }
 0x4eb   : > { %v1659_v7 = vpop.eup %1658 }
 0x4ec   : > { %v661_v17 = vsel %vm277_vm1, %v1659_v7, 0.0 }
 0x4ed   : > { %662 = vadd.xlane.f32.xlu1 %v661_v17 }
 0x4fb   : > { %692 = vrot.lane.b32.xlu0 %v1954_v18, %s1791_s7 }
 0x4fe   : > { %797 = vrot.lane.b32.xlu1 %v795_v20, %s1790_s11 }
 0x562   : > { %v648_v24 = vpop.xlane.xlu0 %647 }
 0x563   : > { %v642_v21 = vpop.xlane.xlu1 %641  ;;  %v666_v29 = vmax.f32 %v648_v24, 1e-20 }
 0x564   : > { %v664_v22 = vmax.f32 %v642_v21, 1e-20 }
 0x566   : > { %1660 = vrcp.f32 %v664_v22 }
 0x56a   : > { %v645_v27 = vpop.xlane.xlu1 %644 }
 0x56b   : > { %v665_v30 = vmax.f32 %v645_v27, 1e-20 }
 0x56d   : > { %1662 = vrcp.f32 %v665_v30 }
 0x56e   : > { %v651_v31 = vpop.xlane.xlu1 %650  ;;  %v660_v32 = vpop.xlane.xlu0 %659  ;;  %1664 = vrcp.f32 %v666_v29 }
 0x56f   : > { %v667_v33 = vmax.f32 %v651_v31, 1e-20  ;;  %v670_v48 = vmax.f32 %v660_v32, 1e-20 }
 0x570   : > { %v1661_v41 = vpop.eup %1660 }
 0x571   : > { %1666 = vrcp.f32 %v667_v33  ;;  %v680_v50 = vmul.f32 %v1661_v41, %v2061_v45 }
 0x572   : > { %v654_v36 = vpop.xlane.xlu0 %653 }
 0x573   : > { %v668_v37 = vmax.f32 %v654_v36, 1e-20 }
 0x575   : > { %1668 = vrcp.f32 %v668_v37 }
 0x576   : > { %v657_v46 = vpop.xlane.xlu1 %656  ;;  %v693_v18 = vpop.permute.xlu0 %692 }
 0x577   : > { %v1663_v47 = vpop.eup %1662  ;;  %v669_v49 = vmax.f32 %v657_v46, 1e-20  ;;  %1539 = vmatprep.subr.bf16.mxu0 %v693_v18 }
 0x578   : > { %1540 = vmatpush3.bf16.msra.mxu0 %v693_v18  ;;  %v681_v51 = vmul.f32 %v1663_v47, %v1649_v54  ;;  %v1665_v53 = vpop.eup %1664 }
 0x579   : > { %1670 = vrcp.f32 %v669_v49  ;;  %v682_v62 = vmul.f32 %v1665_v53, %v2059_v38 }
 0x57a   : > { %v663_v55 = vpop.xlane.xlu1 %662  ;;  %v688_v57 = vpack.c.bf16 %v681_v51, %v680_v50  ;;  %1672 = vrcp.f32 %v670_v48 }
 0x57b   : > { %v1667_v58 = vpop.eup %1666  ;;  %v671_v60 = vmax.f32 %v663_v55, 1e-20 }
 0x57c   : > { %v683_v0 = vmul.f32 %v1667_v58, %v1651_v59  ;;  %1541 = vmatprep.mubr.msk.bf16.mxu0 %vm277_vm1, %v688_v57 }
 0x57d   : > { %1674 = vrcp.f32 %v671_v60 }
 0x57e   : > { %v798_v2 = vpop.permute.xlu1 %797  ;;  %v689_v5 = vpack.c.bf16 %v683_v0, %v682_v62 }
 0x57f   : > { %v800_v13 = vmul.f32 %v798_v2, %v1938_v11  ;;  %v801_v45 = vmul.f32 %v798_v2, %v1950_v16  ;;  %v1669_v54 = vpop.eup %1668 }
 0x580   : > { %1542 = vmatmul.mubr.msk.bf16.vlgmr.msra.gmra.mrb[8].mxu0 %vm277_vm1, %v689_v5  ;;  %v684_v38 = vmul.f32 %v1669_v54, %v1655_v4 }
 0x581   : > { %806 = vrot.lane.b32.xlu0 %v801_v45, %s1792_s14  ;;  %804 = vrot.lane.b32.xlu1 %v800_v13, %s1792_s14 }
 0x583   : > { %v1671_v17 = vpop.eup %1670 }
 0x584   : > { %v685_v59 = vmul.f32 %v1671_v17, %v1657_v12  ;;  %v1673_v19 = vpop.eup %1672 }
 0x585   : > { %v686_v22 = vmul.f32 %v1673_v19, %v2068_v61  ;;  %v788_v61 = vsub.s32 6, %v1902_v8 }
 0x586   : > { %v690_v20 = vpack.c.bf16 %v685_v59, %v684_v38 }
 0x587   : > { %v1675_v21 = vpop.eup %1674  ;;  %v789_v53 = vrot.slane %v1908_v10, %v788_v61 }
 0x588   : > { %1545 = vmatprep.mubr.msk.bf16.mxu0 %vm277_vm1, %v690_v20  ;;  %v687_v24 = vmul.f32 %v1675_v21, %v1659_v7 }
 0x58a   : > { %v691_v27 = vpack.c.bf16 %v687_v24, %v686_v22 }
 0x58c   : > { %1546 = vmatmul.mubr.msk.bf16.gmra.mrb[12].mxu0 %vm277_vm1, %v691_v27 }
 0x5f3   : > { %v805_v0 = vpop.permute.xlu1 %804  ;;  %v807_v13 = vpop.permute.xlu0 %806 }
 0x653   : > { %v1543_v29 = vpop.f32.mrb[8].mxu0 }
 0x654   : > { %v774_v30 = vmul.f32 %v1543_v29, %v1978_v26  ;;  %v741_v31 = vpop.f32.mrb[9].mxu0  ;;  %v1638_v29 = vld [vmem:[%s2291_s3 + $0x28] sm:$0xff]  }
 0x655   : > { %v772_v32 = vmul.f32 %v741_v31, %v1943_v14  ;;  %v1544_v33 = vpop.f32.mrb[10].mxu0  ;;  %1550 = vmatpush3.bf16.msra.mxu1 %v1638_v29  ;;  %v1639_v31 = vld [vmem:[%s2291_s3 + $0x30] sm:$0xff]  }
 0x656   : > { %v775_v4 = vmul.f32 %v1544_v33, %v1966_v23  ;;  %v744_v12 = vpop.f32.mrb[11].mxu0  ;;  %1551 = vmatprep.subr.bf16.mxu1 %v1788_v1 }
 0x657   : > { %v780_v36 = vadd.f32 %v774_v30, %v772_v32  ;;  %v773_v37 = vmul.f32 %v744_v12, %v1948_v15 }
 0x659   : > { %v781_v41 = vadd.f32 %v775_v4, %v773_v37  ;;  %1552 = vmatpush3.bf16.msra.mxu1 %v1639_v31 }
 0x65f   : > { %v1547_v46 = vpop.f32.mrb[12].mxu0 }
 0x660   : > { %v757_v7 = vpop.f32.mrb[13].mxu0  ;;  %v778_v49 = vmul.f32 %v1547_v46, %v2004_v35 }
 0x661   : > { %v776_v18 = vmul.f32 %v757_v7, %v1985_v28  ;;  %v1548_v47 = vpop.f32.mrb[14].mxu0 }
 0x662   : > { %v760_v48 = vpop.f32.mrb[15].mxu0  ;;  %v779_v57 = vmul.f32 %v1548_v47, %v1997_v34 }
 0x663   : > { %v782_v50 = vadd.f32 %v780_v36, %v776_v18  ;;  %v777_v51 = vmul.f32 %v760_v48, %v1973_v25 }
 0x665   : > { %v784_v55 = vadd.f32 %v782_v50, %v778_v49  ;;  %v783_v58 = vadd.f32 %v781_v41, %v777_v51  ;;  %v853_v49 = vsub.s32 5, %v1902_v8 }
 0x667   : > { %v785_v60 = vadd.f32 %v783_v58, %v779_v57  ;;  %v790_v62 = vmul.f32 %v789_v53, %v784_v55  ;;  %v854_v50 = vrot.slane %v1908_v10, %v853_v49 }
 0x669   : > { %v810_v2 = vadd.f32 %v805_v0, %v790_v62  ;;  %v791_v5 = vmul.f32 %v789_v53, %v785_v60 }
 0x66b   : > { %v812_v45 = vsel %vm322_vm2, %v810_v2, 0.0  ;;  %v811_v54 = vadd.f32 %v807_v13, %v791_v5 }
 0x66c   : > { %813 = vadd.xlane.f32.xlu1 %v812_v45 }
 0x66d   : > { %v815_v17 = vsel %vm322_vm2, %v811_v54, 0.0 }
 0x66e   : > { %816 = vadd.xlane.f32.xlu0 %v815_v17 }
 0x6f9   : > { %v814_v38 = vpop.xlane.xlu1 %813 }
 0x6fa   : > { %v1447_v59 = vmul.f32 -1.442695, %v814_v38 }
 0x6fb   : > { %v817_v19 = vpop.xlane.xlu0 %816 }
 0x6fc   : > { %1676 = vpow2.f32 %v1447_v59  ;;  %v1448_v20 = vmul.f32 -1.442695, %v817_v19 }
 0x6fe   : > { %1678 = vpow2.f32 %v1448_v20 }
 0x706   : > { %v1677_v21 = vpop.eup %1676 }
 0x707   : > { %v824_v22 = vadd.f32 1.0, %v1677_v21 }
 0x708   : > { %v1679_v24 = vpop.eup %1678 }
 0x709   : > { %1680 = vrcp.f32 %v824_v22  ;;  %v825_v27 = vadd.f32 1.0, %v1679_v24 }
 0x70b   : > { %1682 = vrcp.f32 %v825_v27 }
 0x713   : > { %v1681_v30 = vpop.eup %1680 }
 0x714   : > { %v832_v32 = vsub.f32 1.0, %v1681_v30  ;;  %v830_v41 = vmul.f32 %v1681_v30, %v1938_v11 }
 0x715   : > { %v1683_v33 = vpop.eup %1682 }
 0x716   : > { %v834_v4 = vmul.f32 %v832_v32, %v784_v55  ;;  %v833_v12 = vsub.f32 1.0, %v1683_v33  ;;  %v831_v46 = vmul.f32 %v1683_v33, %v1950_v16 }
 0x718   : > { %838 = vrot.lane.b32.xlu0 %v834_v4, %s1790_s11  ;;  %v835_v36 = vmul.f32 %v833_v12, %v785_v60 }
 0x71a   : > { %840 = vrot.lane.b32.xlu1 %v835_v36, %s1790_s11 }
 0x78a   : > { %v839_v37 = vpop.permute.xlu0 %838 }
 0x78b   : > { %v844_v7 = vadd.f32 %v839_v37, %v830_v41 }
 0x78c   : > { %v841_v61 = vpop.permute.xlu1 %840 }
 0x78d   : > { %v845_v18 = vadd.f32 %v841_v61, %v831_v46 }
 0x78f   : > { %v850_v47 = vpack.c.bf16 %v845_v18, %v844_v7 }
 0x791   : > { %856 = vrot.lane.b32.xlu1 %v850_v47, %s1792_s14 }
 0x803   : > { %v857_v48 = vpop.permute.xlu1 %856 }
 0x804   : > { %1554 = vmatmul.mubr.msk.bf16.vlgmr.msra.gmra.mrb[12].mxu1 %vm322_vm2, %v857_v48 }
 0x8d7   : > { %v907_v51 = vpop.f32.mrb[12].mxu1 }
 0x8d8   : > { %v2119_v53 = vadd.f32 %v907_v51, %v854_v50  ;;  %v1555_v55 = vpop.f32.mrb[13].mxu1 }
 0x8d9   : > { %v910_v11 = vpop.f32.mrb[14].mxu1 }
 0x8da   : > { %v2121_v57 = vadd.f32 %v910_v11, %v854_v50  ;;  %v1556_v16 = vpop.f32.mrb[15].mxu1  ;;  %v914_v60 = vmul.f32 %v2119_v53, %v1943_v14  ;;  %v916_v45 = vmul.f32 %v2119_v53, %v1978_v26  ;;  %v918_v54 = vmul.f32 %v2119_v53, %v1985_v28 }
 0x8db   : > { %v920_v19 = vmul.f32 %v2119_v53, %v2004_v35 }
 0x8dc   : > { %v2125_v58 = vpack.c.bf16 %v2121_v57, %v2119_v53  ;;  %v915_v62 = vmul.f32 %v2121_v57, %v1948_v15  ;;  %v917_v5 = vmul.f32 %v2121_v57, %v1966_v23  ;;  %v919_v13 = vmul.f32 %v2121_v57, %v1973_v25 }
 0x8dd   : > { %v921_v59 = vmul.f32 %v2121_v57, %v1997_v34 }
 0x8de   : > { %928 = vrot.lane.b32.xlu0 %v2125_v58, %s1790_s11  ;;  %v922_v10 = vpack.c.bf16 %v915_v62, %v914_v60  ;;  %v923_v17 = vpack.c.bf16 %v917_v5, %v916_v45  ;;  %v924_v38 = vpack.c.bf16 %v919_v13, %v918_v54 }
 0x8df   : > { %v925_v20 = vpack.c.bf16 %v921_v59, %v920_v19 }
 0x8e0   : > { %1559 = vmatprep.mubr.msk.bf16.mxu0 %vm322_vm2, %v922_v10 }
 0x950   : > { %v929_v0 = vpop.permute.xlu0 %928 }
 0x951   : > { %v943_v2 = vsel %vm322_vm2, %v929_v0, 0  ;;  %1586 = vmatprep.subr.msk.bf16.mxu0 %vm322_vm2, %v929_v0 }
 0x952   : > { %1558 = vmatpush3.bf16.xpose.msra.mxu0 %v943_v2 }
 0x953   : > { %1577 = vmatprep.subr.bf16.mxu0 %v1788_v1 }
 0x959   : > { %1560 = vmatmul.mubr.msk.bf16.vlgmr.msra.gmra.mrb[16].mxu0 %vm322_vm2, %v923_v17 }
 0x95a   : > { %1563 = vmatprep.mubr.msk.bf16.mxu0 %vm322_vm2, %v924_v38 }
 0x961   : > { %1564 = vmatmul.mubr.msk.bf16.gmra.mrb[20].mxu0 %vm322_vm2, %v925_v20 }
 0x962   : > { %1581 = vmatprep.mubr.msk.bf16.mxu0 %vm1789_vm0, %v1788_v1 }
 0xa2c   : > { %v1561_v21 = vpop.f32.mrb[16].mxu0 }
 0xa2d   : > { %v979_v22 = vpop.f32.mrb[17].mxu0  ;;  %v988_v33 = vadd.f32 %v1561_v21, %v2020_v39 }
 0xa2e   : > { %v980_v24 = vadd.f32 %v979_v22, %v2023_v40  ;;  %v1562_v27 = vpop.f32.mrb[18].mxu0 }
 0xa2f   : > { %v982_v29 = vpop.f32.mrb[19].mxu0  ;;  %v991_v30 = vadd.f32 %v1562_v27, %v2026_v42  ;;  %v1016_v42 = vsel %vm277_vm1, %v988_v33, -inf }
 0xa30   : > { %v983_v31 = vadd.f32 %v982_v29, %v2033_v52  ;;  %v1010_v32 = vsel %vm277_vm1, %v980_v24, -inf }
 0xa31   : > { %1011 = vmax.xlane.f32.xlu1 %v1010_v32  ;;  %v1019_v36 = vsel %vm277_vm1, %v991_v30, -inf }
 0xa32   : > { %v1013_v4 = vsel %vm277_vm1, %v983_v31, -inf }
 0xa33   : > { %1014 = vmax.xlane.f32.xlu0 %v1013_v4 }
 0xa34   : > { %v1565_v12 = vpop.f32.mrb[20].mxu0 }
 0xa35   : > { %v995_v37 = vpop.f32.mrb[21].mxu0  ;;  %1020 = vmax.xlane.f32.xlu1 %v1019_v36  ;;  %v1004_v61 = vadd.f32 %v1565_v12, %v2039_v56 }
 0xa36   : > { %v996_v40 = vadd.f32 %v995_v37, %v2044_v63  ;;  %v1566_v41 = vpop.f32.mrb[22].mxu0 }
 0xa37   : > { %v998_v46 = vpop.f32.mrb[23].mxu0  ;;  %1017 = vmax.xlane.f32.xlu0 %v1016_v42  ;;  %v1007_v39 = vadd.f32 %v1566_v41, %v2054_v6  ;;  %v1028_v47 = vsel %vm277_vm1, %v1004_v61, -inf }
 0xa38   : > { %v999_v52 = vadd.f32 %v998_v46, %v2049_v3  ;;  %v1022_v7 = vsel %vm277_vm1, %v996_v40, -inf  ;;  %v2190_v46 = vld [vmem:[%s2292_s4 + $0x8] sm:$0xff] }
 0xa39   : > { %v1031_v63 = vsel %vm277_vm1, %v1007_v39, -inf }
 0xa3a   : > { %v1025_v18 = vsel %vm277_vm1, %v999_v52, -inf }
 0xa3b   : > { %1023 = vmax.xlane.f32.xlu0 %v1022_v7  ;;  %1026 = vmax.xlane.f32.xlu1 %v1025_v18 }
 0xa3f   : > { %1029 = vmax.xlane.f32.xlu0 %v1028_v47  ;;  %1032 = vmax.xlane.f32.xlu1 %v1031_v63 }
 0xabe   : > { %v1012_v48 = vpop.xlane.xlu1 %1011 }
 0xabf   : > { %v1034_v51 = vsub.f32 %v980_v24, %v1012_v48 }
 0xac0   : > { %v1015_v49 = vpop.xlane.xlu0 %1014 }
 0xac1   : > { %v1035_v50 = vsub.f32 %v983_v31, %v1015_v49  ;;  %v1042_v60 = vmul.f32 1.442695, %v1034_v51 }
 0xac2   : > { %v1021_v3 = vpop.xlane.xlu1 %1020 }
 0xac3   : > { %v1044_v56 = vmul.f32 1.442695, %v1035_v50  ;;  %v1037_v55 = vsub.f32 %v991_v30, %v1021_v3 }
 0xac4   : > { %v1018_v6 = vpop.xlane.xlu0 %1017 }
 0xac5   : > { %1684 = vpow2.f32 %v1044_v56  ;;  %v1048_v11 = vmul.f32 1.442695, %v1037_v55  ;;  %v1036_v16 = vsub.f32 %v988_v33, %v1018_v6 }
 0xac7   : > { %1686 = vpow2.f32 %v1048_v11  ;;  %v1046_v62 = vmul.f32 1.442695, %v1036_v16 }
 0xac8   : > { %v1024_v10 = vpop.xlane.xlu0 %1023  ;;  %v1027_v0 = vpop.xlane.xlu1 %1026 }
 0xac9   : > { %1688 = vpow2.f32 %v1046_v62  ;;  %v1039_v2 = vsub.f32 %v999_v52, %v1027_v0  ;;  %v1038_v5 = vsub.f32 %v996_v40, %v1024_v10  ;;  %v1213_v52 = vrot.slane %v2190_v46, %v354_v43 }
 0xaca   : > { %1690 = vpow2.f32 %v1042_v60 }
 0xacb   : > { %v1052_v13 = vmul.f32 1.442695, %v1039_v2  ;;  %v1050_v19 = vmul.f32 1.442695, %v1038_v5 }
 0xacc   : > { %v1030_v45 = vpop.xlane.xlu0 %1029  ;;  %v1033_v54 = vpop.xlane.xlu1 %1032 }
 0xacd   : > { %v1040_v17 = vsub.f32 %v1004_v61, %v1030_v45  ;;  %v1041_v38 = vsub.f32 %v1007_v39, %v1033_v54  ;;  %1692 = vpow2.f32 %v1052_v13 }
 0xacf   : > { %v2170_v59 = vpop.eup %1684  ;;  %v1054_v20 = vmul.f32 1.442695, %v1040_v17  ;;  %v1056_v21 = vmul.f32 1.442695, %v1041_v38 }
 0xad0   : > { %v1061_v22 = vsel %vm277_vm1, %v2170_v59, 0.0 }
 0xad1   : > { %v2174_v24 = vpop.eup %1686  ;;  %1694 = vpow2.f32 %v1054_v20  ;;  %1062 = vadd.xlane.f32.xlu1 %v1061_v22 }
 0xad2   : > { %1696 = vpow2.f32 %v1056_v21  ;;  %v1067_v30 = vsel %vm277_vm1, %v2174_v24, 0.0 }
 0xad3   : > { %v1689_v27 = vpop.eup %1688  ;;  %1698 = vpow2.f32 %v1050_v19 }
 0xad4   : > { %v1064_v29 = vsel %vm277_vm1, %v1689_v27, 0.0  ;;  %v1691_v31 = vpop.eup %1690 }
 0xad5   : > { %1065 = vadd.xlane.f32.xlu0 %v1064_v29  ;;  %1068 = vadd.xlane.f32.xlu1 %v1067_v30  ;;  %v1058_v33 = vsel %vm277_vm1, %v1691_v31, 0.0 }
 0xad7   : > { %v2179_v32 = vpop.eup %1692 }
 0xad8   : > { %v1073_v4 = vsel %vm277_vm1, %v2179_v32, 0.0 }
 0xad9   : > { %1059 = vadd.xlane.f32.xlu0 %v1058_v33  ;;  %1074 = vadd.xlane.f32.xlu1 %v1073_v4 }
 0xadb   : > { %v1695_v12 = vpop.eup %1694 }
 0xadc   : > { %v1697_v36 = vpop.eup %1696  ;;  %v1076_v37 = vsel %vm277_vm1, %v1695_v12, 0.0 }
 0xadd   : > { %v1699_v40 = vpop.eup %1698  ;;  %1077 = vadd.xlane.f32.xlu0 %v1076_v37  ;;  %v1079_v41 = vsel %vm277_vm1, %v1697_v36, 0.0 }
 0xade   : > { %1080 = vadd.xlane.f32.xlu1 %v1079_v41  ;;  %v1070_v42 = vsel %vm277_vm1, %v1699_v40, 0.0 }
 0xae1   : > { %1071 = vadd.xlane.f32.xlu0 %v1070_v42 }
 0xaef   : > { %1215 = vrot.lane.b32.xlu1 %v1213_v52, %s1790_s11 }
 0xaf7   : > { %1110 = vrot.lane.b32.xlu0 %v2125_v58, %s1791_s7  ;;  %s1472_s7 = sshll.u32 %s1847_s22, 8 }
 0xaf8   : > { %s2245_s16 = scalar_lea.hbm %s2293_s5, %s1472_s7 }
 0xb5e   : > { %v1063_v61 = vpop.xlane.xlu1 %1062 }
 0xb5f   : > { %v1083_v18 = vmax.f32 %v1063_v61, 1e-20 }
 0xb62   : > { %v1066_v39 = vpop.xlane.xlu0 %1065  ;;  %v1069_v7 = vpop.xlane.xlu1 %1068 }
 0xb63   : > { %v1084_v47 = vmax.f32 %v1066_v39, 1e-20  ;;  %v1085_v63 = vmax.f32 %v1069_v7, 1e-20 }
 0xb65   : > { %1700 = vrcp.f32 %v1084_v47 }
 0xb66   : > { %1702 = vrcp.f32 %v1085_v63  ;;  %v1060_v48 = vpop.xlane.xlu0 %1059  ;;  %v1075_v50 = vpop.xlane.xlu1 %1074 }
 0xb67   : > { %1704 = vrcp.f32 %v1083_v18  ;;  %v1082_v49 = vmax.f32 %v1060_v48, 1e-20  ;;  %v1087_v43 = vmax.f32 %v1075_v50, 1e-20 }
 0xb69   : > { %1706 = vrcp.f32 %v1082_v49 }
 0xb6a   : > { %v1078_v3 = vpop.xlane.xlu0 %1077 }
 0xb6b   : > { %v1088_v51 = vmax.f32 %v1078_v3, 1e-20  ;;  %v1081_v56 = vpop.xlane.xlu1 %1080 }
 0xb6c   : > { %v1089_v55 = vmax.f32 %v1081_v56, 1e-20 }
 0xb6d   : > { %1708 = vrcp.f32 %v1088_v51 }
 0xb6e   : > { %1710 = vrcp.f32 %v1089_v55  ;;  %v1072_v58 = vpop.xlane.xlu0 %1071 }
 0xb6f   : > { %v1701_v6 = vpop.eup %1700  ;;  %1712 = vrcp.f32 %v1087_v43  ;;  %v1086_v11 = vmax.f32 %v1072_v58, 1e-20  ;;  %v1216_v16 = vpop.permute.xlu1 %1215 }
 0xb70   : > { %v1703_v60 = vpop.eup %1702  ;;  %v1218_v62 = vmul.f32 %v1216_v16, %v2119_v53  ;;  %v1219_v10 = vmul.f32 %v1216_v16, %v2121_v57  ;;  %v1100_v13 = vmul.f32 %v1701_v6, %v1689_v27 }
 0xb71   : > { %v1705_v0 = vpop.eup %1704  ;;  %1714 = vrcp.f32 %v1086_v11  ;;  %v1101_v45 = vmul.f32 %v1703_v60, %v2174_v24 }
 0xb72   : > { %1224 = vrot.lane.b32.xlu0 %v1219_v10, %s1792_s14  ;;  %1222 = vrot.lane.b32.xlu1 %v1218_v62, %s1792_s14  ;;  %v1111_v2 = vpop.permute.xlu0 %1110  ;;  %v1099_v17 = vmul.f32 %v1705_v0, %v2170_v59  ;;  %v1640_v0 = vld [vmem:[%s2291_s3 + $0x38] sm:$0xff]  }
 0xb73   : > { %v1707_v5 = vpop.eup %1706  ;;  %1567 = vmatprep.subr.bf16.mxu1 %v1111_v2  ;;  %v1107_v20 = vpack.c.bf16 %v1101_v45, %v1100_v13  ;;  %1578 = vmatpush3.bf16.msra.mxu0 %v1640_v0 }
 0xb74   : > { %1568 = vmatpush3.bf16.msra.mxu1 %v1111_v2  ;;  %v1098_v54 = vmul.f32 %v1707_v5, %v1691_v31  ;;  %v1641_v5 = vld [vmem:[%s2291_s3 + $0x40] sm:$0xff]   ;;  %1579 = vmatprep.subr.bf16.mxu0 %v1788_v1 }
 0xb76   : > { %v1106_v38 = vpack.c.bf16 %v1099_v17, %v1098_v54 }
 0xb77   : > { %v1709_v19 = vpop.eup %1708  ;;  %1580 = vmatpush3.bf16.msra.mxu0 %v1641_v5 }
 0xb78   : > { %v1711_v21 = vpop.eup %1710  ;;  %1569 = vmatprep.mubr.msk.bf16.mxu1 %vm277_vm1, %v1106_v38  ;;  %v1104_v30 = vmul.f32 %v1709_v19, %v1695_v12 }
 0xb79   : > { %v1713_v22 = vpop.eup %1712  ;;  %1570 = vmatmul.mubr.msk.bf16.vlgmr.msra.gmra.mrb[16].mxu1 %vm277_vm1, %v1107_v20  ;;  %v1105_v33 = vmul.f32 %v1711_v21, %v1697_v36 }
 0xb7a   : > { %v1103_v24 = vmul.f32 %v1713_v22, %v2179_v32 }
 0xb7b   : > { %v1715_v29 = vpop.eup %1714  ;;  %v1109_v37 = vpack.c.bf16 %v1105_v33, %v1104_v30 }
 0xb7c   : > { %v1102_v27 = vmul.f32 %v1715_v29, %v1699_v40 }
 0xb7e   : > { %v1108_v4 = vpack.c.bf16 %v1103_v24, %v1102_v27  ;;  %v1272_v27 = vrot.slane %v2190_v46, %v360_v44 }
 0xb80   : > { %1573 = vmatprep.mubr.msk.bf16.mxu1 %vm277_vm1, %v1108_v4 }
 0xb81   : > { %1574 = vmatmul.mubr.msk.bf16.gmra.mrb[20].mxu1 %vm277_vm1, %v1109_v37 }
 0xbe4   : > { %v1223_v51 = vpop.permute.xlu1 %1222  ;;  %v1225_v55 = vpop.permute.xlu0 %1224 }
 0xc4c   : > { %v1571_v59 = vpop.f32.mrb[16].mxu1 }
 0xc4d   : > { %v1192_v31 = vmul.f32 %v1571_v59, %v1978_v26  ;;  %v1159_v41 = vpop.f32.mrb[17].mxu1 }
 0xc4e   : > { %v1190_v42 = vmul.f32 %v1159_v41, %v1943_v14  ;;  %v1572_v52 = vpop.f32.mrb[18].mxu1  ;;  %v1207_v14 = vrot.slane %v2190_v46, %v269_v9 }
 0xc4f   : > { %v1193_v61 = vmul.f32 %v1572_v52, %v1966_v23  ;;  %v1162_v12 = vpop.f32.mrb[19].mxu1 }
 0xc50   : > { %v1198_v36 = vadd.f32 %v1192_v31, %v1190_v42  ;;  %v1191_v40 = vmul.f32 %v1162_v12, %v1948_v15 }
 0xc52   : > { %v1199_v32 = vadd.f32 %v1193_v61, %v1191_v40 }
 0xc54   : > { %v1575_v39 = vpop.f32.mrb[20].mxu1 }
 0xc55   : > { %v1175_v7 = vpop.f32.mrb[21].mxu1  ;;  %v1196_v48 = vmul.f32 %v1575_v39, %v2004_v35 }
 0xc56   : > { %v1194_v18 = vmul.f32 %v1175_v7, %v1985_v28  ;;  %v1576_v47 = vpop.f32.mrb[22].mxu1 }
 0xc57   : > { %v1178_v63 = vpop.f32.mrb[23].mxu1  ;;  %v1197_v50 = vmul.f32 %v1576_v47, %v1997_v34 }
 0xc58   : > { %v1200_v26 = vadd.f32 %v1198_v36, %v1194_v18  ;;  %v1195_v49 = vmul.f32 %v1178_v63, %v1973_v25 }
 0xc5a   : > { %v1202_v23 = vadd.f32 %v1200_v26, %v1196_v48  ;;  %v1201_v15 = vadd.f32 %v1199_v32, %v1195_v49 }
 0xc5c   : > { %v1203_v3 = vadd.f32 %v1201_v15, %v1197_v50  ;;  %v1208_v43 = vmul.f32 %v1207_v14, %v1202_v23 }
 0xc5e   : > { %v1228_v56 = vadd.f32 %v1223_v51, %v1208_v43  ;;  %v1209_v28 = vmul.f32 %v1207_v14, %v1203_v3 }
 0xc60   : > { %v1230_v58 = vsel %vm322_vm2, %v1228_v56, 0.0  ;;  %v1229_v35 = vadd.f32 %v1225_v55, %v1209_v28 }
 0xc61   : > { %1231 = vadd.xlane.f32.xlu1 %v1230_v58 }
 0xc62   : > { %v1233_v25 = vsel %vm322_vm2, %v1229_v35, 0.0 }
 0xc63   : > { %1234 = vadd.xlane.f32.xlu0 %v1233_v25 }
 0xcee   : > { %v1232_v6 = vpop.xlane.xlu1 %1231 }
 0xcef   : > { %v1460_v11 = vmul.f32 -1.442695, %v1232_v6 }
 0xcf0   : > { %v1235_v9 = vpop.xlane.xlu0 %1234 }
 0xcf1   : > { %1716 = vpow2.f32 %v1460_v11  ;;  %v1461_v16 = vmul.f32 -1.442695, %v1235_v9 }
 0xcf3   : > { %1718 = vpow2.f32 %v1461_v16 }
 0xcfb   : > { %v1717_v34 = vpop.eup %1716 }
 0xcfc   : > { %v1242_v60 = vadd.f32 1.0, %v1717_v34 }
 0xcfd   : > { %v1719_v62 = vpop.eup %1718 }
 0xcfe   : > { %1720 = vrcp.f32 %v1242_v60  ;;  %v1243_v10 = vadd.f32 1.0, %v1719_v62 }
 0xd00   : > { %1722 = vrcp.f32 %v1243_v10 }
 0xd08   : > { %v1721_v2 = vpop.eup %1720 }
 0xd09   : > { %v1250_v13 = vsub.f32 1.0, %v1721_v2  ;;  %v1248_v20 = vmul.f32 %v1721_v2, %v2119_v53 }
 0xd0a   : > { %v1723_v45 = vpop.eup %1722 }
 0xd0b   : > { %v1252_v54 = vmul.f32 %v1250_v13, %v1202_v23  ;;  %v1251_v17 = vsub.f32 1.0, %v1723_v45  ;;  %v1249_v21 = vmul.f32 %v1723_v45, %v2121_v57 }
 0xd0d   : > { %1256 = vrot.lane.b32.xlu0 %v1252_v54, %s1790_s11  ;;  %v1253_v38 = vmul.f32 %v1251_v17, %v1203_v3 }
 0xd0f   : > { %1258 = vrot.lane.b32.xlu1 %v1253_v38, %s1790_s11  ;;  %s232_s11 = scalar_lea.vmem [#allocation2], %s1426_s12 }
 0xd10   : > { %s1348_s13 = sshll.u32 %s232_s11, 4  ;;  %s2240_s13 = int_to_ptr.vmem [resolvable:$true] %s1348_s13 }
 0xd11   : > { %s1724_s22 = scalar_lea.vmem %s2240_s13, 256  ;;  %p1731_p0 = scmp.lt.s32.totalorder %s2240_s13, %s1729_s25 }
 0xd12   : > { %p1725_p11 = scmp.ne.s32.totalorder %s2240_s13, %s1724_s22  ;;  %p1732_p1 = scmp.lt.s32.totalorder %s1730_s26, %s1724_s22 }
 0xd14   : > { %p1726_p12 = pnand %p1725_p11, %p1864_p5  ;;  %p1733_p2 = por %p1732_p1, %p1731_p0 }
 0xd16   : > { %p1727_p13 = pneg %p1726_p12 }
 0xd18   : > { %p1734_p3 = pnand %p1733_p2, %p1727_p13 }
 0xd7f   : > { %v1257_v19 = vpop.permute.xlu0 %1256 }
 0xd80   : > { %v1262_v29 = vadd.f32 %v1257_v19, %v1248_v20 }
 0xd81   : > { %v1259_v22 = vpop.permute.xlu1 %1258 }
 0xd82   : > { %v1263_v30 = vadd.f32 %v1259_v22, %v1249_v21 }
 0xd84   : > { %v1268_v1 = vpack.c.bf16 %v1263_v30, %v1262_v29 }
 0xd86   : > { %1274 = vrot.lane.b32.xlu1 %v1268_v1, %s1792_s14 }
 0xdf8   : > { %v1275_v33 = vpop.permute.xlu1 %1274 }
 0xdf9   : > { %1582 = vmatmul.mubr.msk.bf16.vlgmr.msra.gmra.mrb[24].mxu0 %vm322_vm2, %v1275_v33 }
 0xecc   : > { %v1325_v53 = vpop.f32.mrb[24].mxu0 }
 0xecd   : > { %v1326_v57 = vadd.f32 %v1325_v53, %v1272_v27  ;;  %v1583_v24 = vpop.f32.mrb[25].mxu0 }
 0xece   : > { %v1328_v4 = vpop.f32.mrb[26].mxu0 }
 0xecf   : > { %1332 = vst [vmem:[%s232_s11] sm:$0xff] %v1326_v57  ;;  %v1329_v37 = vadd.f32 %v1328_v4, %v1272_v27  ;;  %v1584_v59 = vpop.f32.mrb[27].mxu0 }
 0xed1   : > { %1333 = vst [vmem:[%s232_s11 + $0x8] sm:$0xff] %v1329_v37 }
 0xed2   : > { %1737 = shalt.err (!%p1734_p3)
}
 0xed3   : > { %s1738_s30 = scalar_lea.hbm %s2245_s16, 256  ;;  %s1742_s9 = scalar_lea.hbm %s2293_s5, 512 }
 0xed4   : > { %p1739_p4 = scmp.ne.s32.totalorder %s2245_s16, %s1738_s30  ;;  %p1743_p9 = scmp.lt.u32.totalorder %s2245_s16, %s2293_s5 }
 0xed5   : > { %p1744_p10 = scmp.lt.u32.totalorder %s1742_s9, %s1738_s30  ;;  %p1746_p12 = scmp.lt.u32.totalorder %s1738_s30, %s2245_s16 }
 0xed6   : > { %p1740_p7 = pnand %p1739_p4, %p1864_p5 }
 0xed7   : > { %p1745_p11 = por %p1744_p10, %p1743_p9 }
 0xed8   : > { %p1741_p8 = pneg %p1740_p7 }
 0xed9   : > { %p1747_p13 = por %p1746_p12, %p1745_p11 }
 0xedb   : > { %p1748_p0 = pnand %p1747_p13, %p1741_p8 }
 0xedd   : > { %1751 = shalt.err (!%p1748_p0)
}
 0xede   : > { %s1794_s11 = smov 128   ;;  %s1795_s7 = smov 8  }
 0xedf   : > { %1587 = dma.vmem_to_hbm [thread:$0]  (%p1864_p5), %s2240_s13, 256, %s2245_s16, %s2247_s17, %s1794_s11, %s1794_s11, %s1795_s7  }
 0xee0 PF: > { %p1593_p1 = scmp.ge.s32.totalorder %s1786_s21, 2  ;;  %s1363_s14 = sand.u32 1, %s1774_s18  }
 0xee1   : > { %s1364_s15 = scalar_lea.sflag [#allocation3], %s1363_s14 }
 0xee2   : > { %p1590_p2 = pnand %p1593_p1, %p1868_p6 }
 0xee4   : > { %1769 = dma.done.wait (!%p1590_p2), %s1364_s15, 256  }
 0xee5   : > { %1771 = vsyncadd (!%p1590_p2), %s1364_s15, 4294967040  ;;  %p15_p3 = scmp.ge.s32.totalorder %s1851_s24, 4   ;;  %s2296_s18 = smov %s1778_s19 }
 0xee6   : > { %s2297_s19 = smov %s1782_s20  ;;  %s2298_s20 = smov %s1862_s27 }
 0xee7   : > { %s2299_s21 = smov %s1851_s24  ;;  %17 = sbr.rel (!%p15_p3) target bundleno = 3 (0x3), region = 78 }
 0xeee   :  { %1369 = vsyncpa [#allocation3], 1 }
 0xeef   :  { %1371 = vsyncpa [#allocation3 + $0x1], 1 }

</bundles_post_ra>
